<compile_context>
chip_gen: v5e
topology: v5e:2x2
jax: 0.10.0
libtpu: 0.0.40
codegen_flags: <defaults>
</compile_context>

<pallas_src>
import jax
import jax.numpy as jnp
from jax.experimental import pallas as pl
from jax.experimental.pallas import tpu as pltpu


def _choose_time_block(T: int) -> int:
    """Largest multiple-of-8 divisor of T (<=32), else the full time axis."""
    for cand in (32, 24, 16, 8):
        if T % cand == 0:
            return cand
    return T  # block second-minor dim must be a multiple of 8 or the full dim


def lstm_block_kernel(x_ref, wih_ref, whh_ref, b_ref, wlin_ref, blin_ref,
                      out_ref, h_scr, c_scr, hall_scr):
    """One grid step == one time block (T_BLK steps) of the LSTM + fused Linear head."""
    B, T_BLK, I = x_ref.shape
    H = whh_ref.shape[0]
    O = wlin_ref.shape[1]

    tb = pl.program_id(0)

    @pl.when(tb == 0)
    def _():
        h_scr[...] = jnp.zeros_like(h_scr)
        c_scr[...] = jnp.zeros_like(c_scr)

    # ---- Phase 1: input projection for the whole block (one well-shaped matmul) ----
    x_flat = x_ref[...].reshape(B * T_BLK, I)                    # rows are b-major
    gates_pre = (jnp.dot(x_flat, wih_ref[...],
                         preferred_element_type=jnp.float32)
                 + b_ref[...])                                   # (B*T_BLK, 4H)
    gates_pre = gates_pre.reshape(B, T_BLK, 4 * H)

    whh = whh_ref[...]
    h = h_scr[...]                                               # (B, H)
    c = c_scr[...]                                               # (B, H)

    # ---- Phase 2: sequential recurrence, fully unrolled over the block ----
    for t in range(T_BLK):                                       # static indices
        gates = gates_pre[:, t, :] + jnp.dot(
            h, whh, preferred_element_type=jnp.float32)          # (B, 4H), order [i,f,g,o]
        i_g = jax.nn.sigmoid(gates[:, 0 * H:1 * H])
        f_g = jax.nn.sigmoid(gates[:, 1 * H:2 * H])
        g_g = jnp.tanh(gates[:, 2 * H:3 * H])
        o_g = jax.nn.sigmoid(gates[:, 3 * H:4 * H])
        c = f_g * c + i_g * g_g
        h = o_g * jnp.tanh(c)
        hall_scr[:, t, :] = h                                    # static sublane store

    # Carry recurrent state to the next time block.
    h_scr[...] = h
    c_scr[...] = c

    # ---- Phase 3: Linear head on the whole block (one matmul, one block store) ----
    h_all = hall_scr[...].reshape(B * T_BLK, H)                  # b-major rows
    y = jnp.dot(h_all, wlin_ref[...],
                preferred_element_type=jnp.float32) + blin_ref[...]
    out_ref[...] = y.reshape(B, T_BLK, O).astype(out_ref.dtype)


@jax.jit
def lstm_forward(x, w_ih_t, w_hh_t, b, w_lin_t, b_lin):
    """x: (B, T, I) float32. Weights are stored pre-transposed:
       w_ih_t = weight_ih_l0.T (I, 4H), w_hh_t = weight_hh_l0.T (H, 4H),
       b = b_ih + b_hh (1, 4H), w_lin_t = linear.weight.T (H, O), b_lin (1, O).
       Returns (B, T, O)."""
    B, T, I = x.shape
    H = w_hh_t.shape[0]
    O = w_lin_t.shape[1]
    T_BLK = _choose_time_block(T)
    NT = T // T_BLK

    return pl.pallas_call(
        lstm_block_kernel,
        out_shape=jax.ShapeDtypeStruct((B, T, O), jnp.float32),
        grid_spec=pltpu.PrefetchScalarGridSpec(
            num_scalar_prefetch=0,
            grid=(NT,),
            in_specs=[
                pl.BlockSpec((B, T_BLK, I), lambda tb: (0, tb, 0)),   # x, native layout
                pl.BlockSpec((I, 4 * H), lambda tb: (0, 0)),          # W_ih^T
                pl.BlockSpec((H, 4 * H), lambda tb: (0, 0)),          # W_hh^T
                pl.BlockSpec((1, 4 * H), lambda tb: (0, 0)),          # b_ih + b_hh
                pl.BlockSpec((H, O), lambda tb: (0, 0)),              # W_lin^T
                pl.BlockSpec((1, O), lambda tb: (0, 0)),              # b_lin
            ],
            out_specs=pl.BlockSpec((B, T_BLK, O), lambda tb: (0, tb, 0)),
            scratch_shapes=[
                pltpu.VMEM((B, H), jnp.float32),          # h state (carried across blocks)
                pltpu.VMEM((B, H), jnp.float32),          # c state (carried across blocks)
                pltpu.VMEM((B, T_BLK, H), jnp.float32),   # per-block hidden states
            ],
        ),
        compiler_params=pltpu.CompilerParams(
            dimension_semantics=("arbitrary",),   # time axis is a sequential recurrence
        ),
    )(x, w_ih_t, w_hh_t, b, w_lin_t, b_lin)


def lstm_reference(x, w_ih_t, w_hh_t, b, w_lin_t, b_lin):
    """Pure-JAX reference matching PyTorch nn.LSTM(batch_first) + nn.Linear."""
    B, T, I = x.shape
    H = w_hh_t.shape[0]

    def step(carry, x_t):
        h, c = carry
        gates = x_t @ w_ih_t + h @ w_hh_t + b[0]
        i_g = jax.nn.sigmoid(gates[:, 0 * H:1 * H])
        f_g = jax.nn.sigmoid(gates[:, 1 * H:2 * H])
        g_g = jnp.tanh(gates[:, 2 * H:3 * H])
        o_g = jax.nn.sigmoid(gates[:, 3 * H:4 * H])
        c_new = f_g * c + i_g * g_g
        h_new = o_g * jnp.tanh(c_new)
        return (h_new, c_new), h_new

    h0 = jnp.zeros((B, H), jnp.float32)
    c0 = jnp.zeros((B, H), jnp.float32)
    _, hs = jax.lax.scan(step, (h0, c0), jnp.transpose(x, (1, 0, 2)))
    out = hs @ w_lin_t + b_lin[0]              # (T, B, O)
    return jnp.transpose(out, (1, 0, 2))       # (B, T, O)


if __name__ == "__main__":
    # Small shapes consistent with the module: input_size=8, output_size=4,
    # hidden_dim=32, num_layers=1, batch=2, seq=8.
    B, T, I, H, O = 2, 8, 8, 32, 4

    key = jax.random.PRNGKey(0)
    k_x, k_wih, k_whh, k_bih, k_bhh, k_wl, k_bl = jax.random.split(key, 7)

    bound = 1.0 / jnp.sqrt(jnp.float32(H))
    x = jax.random.normal(k_x, (B, T, I), jnp.float32)

    # Stored directly in the transposed layout used by the kernel.
    w_ih_t = jax.random.uniform(k_wih, (I, 4 * H), jnp.float32, -bound, bound)
    w_hh_t = jax.random.uniform(k_whh, (H, 4 * H), jnp.float32, -bound, bound)
    b_ih = jax.random.uniform(k_bih, (1, 4 * H), jnp.float32, -bound, bound)
    b_hh = jax.random.uniform(k_bhh, (1, 4 * H), jnp.float32, -bound, bound)
    b = b_ih + b_hh

    lin_bound = 1.0 / jnp.sqrt(jnp.float32(H))
    w_lin_t = jax.random.uniform(k_wl, (H, O), jnp.float32, -lin_bound, lin_bound)
    b_lin = jax.random.uniform(k_bl, (1, O), jnp.float32, -lin_bound, lin_bound)

    out = lstm_forward(x, w_ih_t, w_hh_t, b, w_lin_t, b_lin)
    out = jax.block_until_ready(out)

    ref = lstm_reference(x, w_ih_t, w_hh_t, b, w_lin_t, b_lin)
    assert out.shape == (B, T, O)
    assert jnp.allclose(out, ref, atol=1e-5, rtol=1e-5), "mismatch vs reference"

    print("KERNEL_OK")
</pallas_src>

<mosaic_0001>
module attributes {stable_mosaic.version = 11 : i64} {
  func.func @lstm_block_kernel(%arg0: i32, %arg1: memref<2x8x8xf32, #tpu.memory_space<vmem>>, %arg2: memref<8x128xf32, #tpu.memory_space<vmem>>, %arg3: memref<32x128xf32, #tpu.memory_space<vmem>>, %arg4: memref<1x128xf32, #tpu.memory_space<vmem>>, %arg5: memref<32x4xf32, #tpu.memory_space<vmem>>, %arg6: memref<1x4xf32, #tpu.memory_space<vmem>>, %arg7: memref<2x8x4xf32, #tpu.memory_space<vmem>>, %arg8: memref<2x32xf32, #tpu.memory_space<vmem>>, %arg9: memref<2x32xf32, #tpu.memory_space<vmem>>, %arg10: memref<2x8x32xf32, #tpu.memory_space<vmem>>) attributes {dimension_semantics = [#tpu.dimension_semantics<arbitrary>], iteration_bounds = array<i64: 1>, scalar_prefetch = 0 : i64, scratch_operands = 3 : i64, tpu.core_type = #tpu.core_type<tc>, window_params = [{transform_indices = @transform_0, window_bounds = array<i64: 2, 8, 8>}, {pipeline_mode = #tpu.pipeline_mode<synchronous>, transform_indices = @transform_1, window_bounds = array<i64: 8, 128>}, {pipeline_mode = #tpu.pipeline_mode<synchronous>, transform_indices = @transform_2, window_bounds = array<i64: 32, 128>}, {pipeline_mode = #tpu.pipeline_mode<synchronous>, transform_indices = @transform_3, window_bounds = array<i64: 1, 128>}, {pipeline_mode = #tpu.pipeline_mode<synchronous>, transform_indices = @transform_4, window_bounds = array<i64: 32, 4>}, {pipeline_mode = #tpu.pipeline_mode<synchronous>, transform_indices = @transform_5, window_bounds = array<i64: 1, 4>}, {transform_indices = @transform_6, window_bounds = array<i64: 2, 8, 4>}]} {
    %c0_i32 = arith.constant 0 : i32
    %0 = arith.cmpi eq, %arg0, %c0_i32 : i32
    %1 = arith.extui %0 : i1 to i32
    %c0_i32_0 = arith.constant 0 : i32
    %2 = arith.cmpi ne, %1, %c0_i32_0 : i32
    scf.if %2 {
      %cst_77 = arith.constant 0.000000e+00 : f32
      %281 = vector.broadcast %cst_77 : f32 to vector<2x32xf32>
      %c0_78 = arith.constant 0 : index
      %c0_79 = arith.constant 0 : index
      %282 = vector.load %arg8[%c0_78, %c0_79] : memref<2x32xf32, #tpu.memory_space<vmem>>, vector<2x32xf32>
      tpu.vector_store %arg8[%c0_78, %c0_79], %281 {strides = array<i32>} : memref<2x32xf32, #tpu.memory_space<vmem>>, vector<2x32xf32>,
      %cst_80 = arith.constant 0.000000e+00 : f32
      %283 = vector.broadcast %cst_80 : f32 to vector<2x32xf32>
      %c0_81 = arith.constant 0 : index
      %c0_82 = arith.constant 0 : index
      %284 = vector.load %arg9[%c0_81, %c0_82] : memref<2x32xf32, #tpu.memory_space<vmem>>, vector<2x32xf32>
      tpu.vector_store %arg9[%c0_81, %c0_82], %283 {strides = array<i32>} : memref<2x32xf32, #tpu.memory_space<vmem>>, vector<2x32xf32>,
    } else {
    }
    %c0 = arith.constant 0 : index
    %c0_1 = arith.constant 0 : index
    %c0_2 = arith.constant 0 : index
    %3 = vector.load %arg1[%c0, %c0_1, %c0_2] : memref<2x8x8xf32, #tpu.memory_space<vmem>>, vector<2x8x8xf32>
    %4 = vector.shape_cast %3 : vector<2x8x8xf32> to vector<16x8xf32>
    %c0_3 = arith.constant 0 : index
    %c0_4 = arith.constant 0 : index
    %5 = vector.load %arg2[%c0_3, %c0_4] : memref<8x128xf32, #tpu.memory_space<vmem>>, vector<8x128xf32>
    %cst = arith.constant dense<0.000000e+00> : vector<16x128xf32>
    %6 = tpu.matmul %4, %5, %cst {dimension_numbers = #tpu.dot_dimension_numbers<[1], [0], [0], [1], [0, 0, 1, 1], [], []>} : vector<16x8xf32>, vector<8x128xf32>, vector<16x128xf32> -> vector<16x128xf32>
    %c0_5 = arith.constant 0 : index
    %c0_6 = arith.constant 0 : index
    %7 = vector.load %arg4[%c0_5, %c0_6] : memref<1x128xf32, #tpu.memory_space<vmem>>, vector<1x128xf32>
    %8 = vector.broadcast %7 : vector<1x128xf32> to vector<16x128xf32>
    %9 = arith.addf %6, %8 : vector<16x128xf32>
    %10 = vector.shape_cast %9 : vector<16x128xf32> to vector<2x8x128xf32>
    %c0_7 = arith.constant 0 : index
    %c0_8 = arith.constant 0 : index
    %11 = vector.load %arg3[%c0_7, %c0_8] : memref<32x128xf32, #tpu.memory_space<vmem>>, vector<32x128xf32>
    %c0_9 = arith.constant 0 : index
    %c0_10 = arith.constant 0 : index
    %12 = vector.load %arg8[%c0_9, %c0_10] : memref<2x32xf32, #tpu.memory_space<vmem>>, vector<2x32xf32>
    %c0_11 = arith.constant 0 : index
    %c0_12 = arith.constant 0 : index
    %13 = vector.load %arg9[%c0_11, %c0_12] : memref<2x32xf32, #tpu.memory_space<vmem>>, vector<2x32xf32>
    %14 = vector.extract_strided_slice %10 {offsets = [0, 0, 0], sizes = [2, 1, 128], strides = [1, 1, 1]} : vector<2x8x128xf32> to vector<2x1x128xf32>
    %15 = vector.shape_cast %14 : vector<2x1x128xf32> to vector<2x128xf32>
    %cst_13 = arith.constant dense<0.000000e+00> : vector<2x128xf32>
    %16 = tpu.matmul %12, %11, %cst_13 {dimension_numbers = #tpu.dot_dimension_numbers<[1], [0], [0], [1], [0, 0, 1, 1], [], []>} : vector<2x32xf32>, vector<32x128xf32>, vector<2x128xf32> -> vector<2x128xf32>
    %17 = arith.addf %15, %16 : vector<2x128xf32>
    %18 = vector.extract_strided_slice %17 {offsets = [0, 0], sizes = [2, 32], strides = [1, 1]} : vector<2x128xf32> to vector<2x32xf32>
    %19 = arith.negf %18 : vector<2x32xf32>
    %20 = math.exp %19 : vector<2x32xf32>
    %cst_14 = arith.constant 1.000000e+00 : f32
    %21 = vector.broadcast %cst_14 : f32 to vector<2x32xf32>
    %22 = arith.addf %21, %20 : vector<2x32xf32>
    %23 = arith.divf %21, %22 : vector<2x32xf32>
    %24 = vector.extract_strided_slice %17 {offsets = [0, 32], sizes = [2, 32], strides = [1, 1]} : vector<2x128xf32> to vector<2x32xf32>
    %25 = arith.negf %24 : vector<2x32xf32>
    %26 = math.exp %25 : vector<2x32xf32>
    %cst_15 = arith.constant 1.000000e+00 : f32
    %27 = vector.broadcast %cst_15 : f32 to vector<2x32xf32>
    %28 = arith.addf %27, %26 : vector<2x32xf32>
    %29 = arith.divf %27, %28 : vector<2x32xf32>
    %30 = vector.extract_strided_slice %17 {offsets = [0, 64], sizes = [2, 32], strides = [1, 1]} : vector<2x128xf32> to vector<2x32xf32>
    %31 = math.tanh %30 : vector<2x32xf32>
    %32 = vector.extract_strided_slice %17 {offsets = [0, 96], sizes = [2, 32], strides = [1, 1]} : vector<2x128xf32> to vector<2x32xf32>
    %33 = arith.negf %32 : vector<2x32xf32>
    %34 = math.exp %33 : vector<2x32xf32>
    %cst_16 = arith.constant 1.000000e+00 : f32
    %35 = vector.broadcast %cst_16 : f32 to vector<2x32xf32>
    %36 = arith.addf %35, %34 : vector<2x32xf32>
    %37 = arith.divf %35, %36 : vector<2x32xf32>
    %38 = arith.mulf %29, %13 : vector<2x32xf32>
    %39 = arith.mulf %23, %31 : vector<2x32xf32>
    %40 = arith.addf %38, %39 : vector<2x32xf32>
    %41 = math.tanh %40 : vector<2x32xf32>
    %42 = arith.mulf %37, %41 : vector<2x32xf32>
    %c0_17 = arith.constant 0 : index
    %c0_18 = arith.constant 0 : index
    %c0_19 = arith.constant 0 : index
    %43 = vector.load %arg10[%c0_17, %c0_18, %c0_19] : memref<2x8x32xf32, #tpu.memory_space<vmem>>, vector<2x1x32xf32>
    %44 = vector.shape_cast %43 : vector<2x1x32xf32> to vector<2x32xf32>
    %45 = vector.shape_cast %42 : vector<2x32xf32> to vector<2x1x32xf32>
    tpu.vector_store %arg10[%c0_17, %c0_18, %c0_19], %45 {strides = array<i32>} : memref<2x8x32xf32, #tpu.memory_space<vmem>>, vector<2x1x32xf32>,
    %46 = vector.extract_strided_slice %10 {offsets = [0, 1, 0], sizes = [2, 1, 128], strides = [1, 1, 1]} : vector<2x8x128xf32> to vector<2x1x128xf32>
    %47 = vector.shape_cast %46 : vector<2x1x128xf32> to vector<2x128xf32>
    %cst_20 = arith.constant dense<0.000000e+00> : vector<2x128xf32>
    %48 = tpu.matmul %42, %11, %cst_20 {dimension_numbers = #tpu.dot_dimension_numbers<[1], [0], [0], [1], [0, 0, 1, 1], [], []>} : vector<2x32xf32>, vector<32x128xf32>, vector<2x128xf32> -> vector<2x128xf32>
    %49 = arith.addf %47, %48 : vector<2x128xf32>
    %50 = vector.extract_strided_slice %49 {offsets = [0, 0], sizes = [2, 32], strides = [1, 1]} : vector<2x128xf32> to vector<2x32xf32>
    %51 = arith.negf %50 : vector<2x32xf32>
    %52 = math.exp %51 : vector<2x32xf32>
    %cst_21 = arith.constant 1.000000e+00 : f32
    %53 = vector.broadcast %cst_21 : f32 to vector<2x32xf32>
    %54 = arith.addf %53, %52 : vector<2x32xf32>
    %55 = arith.divf %53, %54 : vector<2x32xf32>
    %56 = vector.extract_strided_slice %49 {offsets = [0, 32], sizes = [2, 32], strides = [1, 1]} : vector<2x128xf32> to vector<2x32xf32>
    %57 = arith.negf %56 : vector<2x32xf32>
    %58 = math.exp %57 : vector<2x32xf32>
    %cst_22 = arith.constant 1.000000e+00 : f32
    %59 = vector.broadcast %cst_22 : f32 to vector<2x32xf32>
    %60 = arith.addf %59, %58 : vector<2x32xf32>
    %61 = arith.divf %59, %60 : vector<2x32xf32>
    %62 = vector.extract_strided_slice %49 {offsets = [0, 64], sizes = [2, 32], strides = [1, 1]} : vector<2x128xf32> to vector<2x32xf32>
    %63 = math.tanh %62 : vector<2x32xf32>
    %64 = vector.extract_strided_slice %49 {offsets = [0, 96], sizes = [2, 32], strides = [1, 1]} : vector<2x128xf32> to vector<2x32xf32>
    %65 = arith.negf %64 : vector<2x32xf32>
    %66 = math.exp %65 : vector<2x32xf32>
    %cst_23 = arith.constant 1.000000e+00 : f32
    %67 = vector.broadcast %cst_23 : f32 to vector<2x32xf32>
    %68 = arith.addf %67, %66 : vector<2x32xf32>
    %69 = arith.divf %67, %68 : vector<2x32xf32>
    %70 = arith.mulf %61, %40 : vector<2x32xf32>
    %71 = arith.mulf %55, %63 : vector<2x32xf32>
    %72 = arith.addf %70, %71 : vector<2x32xf32>
    %73 = math.tanh %72 : vector<2x32xf32>
    %74 = arith.mulf %69, %73 : vector<2x32xf32>
    %c0_24 = arith.constant 0 : index
    %c1 = arith.constant 1 : index
    %c0_25 = arith.constant 0 : index
    %75 = vector.load %arg10[%c0_24, %c1, %c0_25] : memref<2x8x32xf32, #tpu.memory_space<vmem>>, vector<2x1x32xf32>
    %76 = vector.shape_cast %75 : vector<2x1x32xf32> to vector<2x32xf32>
    %77 = vector.shape_cast %74 : vector<2x32xf32> to vector<2x1x32xf32>
    tpu.vector_store %arg10[%c0_24, %c1, %c0_25], %77 {strides = array<i32>} : memref<2x8x32xf32, #tpu.memory_space<vmem>>, vector<2x1x32xf32>,
    %78 = vector.extract_strided_slice %10 {offsets = [0, 2, 0], sizes = [2, 1, 128], strides = [1, 1, 1]} : vector<2x8x128xf32> to vector<2x1x128xf32>
    %79 = vector.shape_cast %78 : vector<2x1x128xf32> to vector<2x128xf32>
    %cst_26 = arith.constant dense<0.000000e+00> : vector<2x128xf32>
    %80 = tpu.matmul %74, %11, %cst_26 {dimension_numbers = #tpu.dot_dimension_numbers<[1], [0], [0], [1], [0, 0, 1, 1], [], []>} : vector<2x32xf32>, vector<32x128xf32>, vector<2x128xf32> -> vector<2x128xf32>
    %81 = arith.addf %79, %80 : vector<2x128xf32>
    %82 = vector.extract_strided_slice %81 {offsets = [0, 0], sizes = [2, 32], strides = [1, 1]} : vector<2x128xf32> to vector<2x32xf32>
    %83 = arith.negf %82 : vector<2x32xf32>
    %84 = math.exp %83 : vector<2x32xf32>
    %cst_27 = arith.constant 1.000000e+00 : f32
    %85 = vector.broadcast %cst_27 : f32 to vector<2x32xf32>
    %86 = arith.addf %85, %84 : vector<2x32xf32>
    %87 = arith.divf %85, %86 : vector<2x32xf32>
    %88 = vector.extract_strided_slice %81 {offsets = [0, 32], sizes = [2, 32], strides = [1, 1]} : vector<2x128xf32> to vector<2x32xf32>
    %89 = arith.negf %88 : vector<2x32xf32>
    %90 = math.exp %89 : vector<2x32xf32>
    %cst_28 = arith.constant 1.000000e+00 : f32
    %91 = vector.broadcast %cst_28 : f32 to vector<2x32xf32>
    %92 = arith.addf %91, %90 : vector<2x32xf32>
    %93 = arith.divf %91, %92 : vector<2x32xf32>
    %94 = vector.extract_strided_slice %81 {offsets = [0, 64], sizes = [2, 32], strides = [1, 1]} : vector<2x128xf32> to vector<2x32xf32>
    %95 = math.tanh %94 : vector<2x32xf32>
    %96 = vector.extract_strided_slice %81 {offsets = [0, 96], sizes = [2, 32], strides = [1, 1]} : vector<2x128xf32> to vector<2x32xf32>
    %97 = arith.negf %96 : vector<2x32xf32>
    %98 = math.exp %97 : vector<2x32xf32>
    %cst_29 = arith.constant 1.000000e+00 : f32
    %99 = vector.broadcast %cst_29 : f32 to vector<2x32xf32>
    %100 = arith.addf %99, %98 : vector<2x32xf32>
    %101 = arith.divf %99, %100 : vector<2x32xf32>
    %102 = arith.mulf %93, %72 : vector<2x32xf32>
    %103 = arith.mulf %87, %95 : vector<2x32xf32>
    %104 = arith.addf %102, %103 : vector<2x32xf32>
    %105 = math.tanh %104 : vector<2x32xf32>
    %106 = arith.mulf %101, %105 : vector<2x32xf32>
    %c0_30 = arith.constant 0 : index
    %c2 = arith.constant 2 : index
    %c0_31 = arith.constant 0 : index
    %107 = vector.load %arg10[%c0_30, %c2, %c0_31] : memref<2x8x32xf32, #tpu.memory_space<vmem>>, vector<2x1x32xf32>
    %108 = vector.shape_cast %107 : vector<2x1x32xf32> to vector<2x32xf32>
    %109 = vector.shape_cast %106 : vector<2x32xf32> to vector<2x1x32xf32>
    tpu.vector_store %arg10[%c0_30, %c2, %c0_31], %109 {strides = array<i32>} : memref<2x8x32xf32, #tpu.memory_space<vmem>>, vector<2x1x32xf32>,
    %110 = vector.extract_strided_slice %10 {offsets = [0, 3, 0], sizes = [2, 1, 128], strides = [1, 1, 1]} : vector<2x8x128xf32> to vector<2x1x128xf32>
    %111 = vector.shape_cast %110 : vector<2x1x128xf32> to vector<2x128xf32>
    %cst_32 = arith.constant dense<0.000000e+00> : vector<2x128xf32>
    %112 = tpu.matmul %106, %11, %cst_32 {dimension_numbers = #tpu.dot_dimension_numbers<[1], [0], [0], [1], [0, 0, 1, 1], [], []>} : vector<2x32xf32>, vector<32x128xf32>, vector<2x128xf32> -> vector<2x128xf32>
    %113 = arith.addf %111, %112 : vector<2x128xf32>
    %114 = vector.extract_strided_slice %113 {offsets = [0, 0], sizes = [2, 32], strides = [1, 1]} : vector<2x128xf32> to vector<2x32xf32>
    %115 = arith.negf %114 : vector<2x32xf32>
    %116 = math.exp %115 : vector<2x32xf32>
    %cst_33 = arith.constant 1.000000e+00 : f32
    %117 = vector.broadcast %cst_33 : f32 to vector<2x32xf32>
    %118 = arith.addf %117, %116 : vector<2x32xf32>
    %119 = arith.divf %117, %118 : vector<2x32xf32>
    %120 = vector.extract_strided_slice %113 {offsets = [0, 32], sizes = [2, 32], strides = [1, 1]} : vector<2x128xf32> to vector<2x32xf32>
    %121 = arith.negf %120 : vector<2x32xf32>
    %122 = math.exp %121 : vector<2x32xf32>
    %cst_34 = arith.constant 1.000000e+00 : f32
    %123 = vector.broadcast %cst_34 : f32 to vector<2x32xf32>
    %124 = arith.addf %123, %122 : vector<2x32xf32>
    %125 = arith.divf %123, %124 : vector<2x32xf32>
    %126 = vector.extract_strided_slice %113 {offsets = [0, 64], sizes = [2, 32], strides = [1, 1]} : vector<2x128xf32> to vector<2x32xf32>
    %127 = math.tanh %126 : vector<2x32xf32>
    %128 = vector.extract_strided_slice %113 {offsets = [0, 96], sizes = [2, 32], strides = [1, 1]} : vector<2x128xf32> to vector<2x32xf32>
    %129 = arith.negf %128 : vector<2x32xf32>
    %130 = math.exp %129 : vector<2x32xf32>
    %cst_35 = arith.constant 1.000000e+00 : f32
    %131 = vector.broadcast %cst_35 : f32 to vector<2x32xf32>
    %132 = arith.addf %131, %130 : vector<2x32xf32>
    %133 = arith.divf %131, %132 : vector<2x32xf32>
    %134 = arith.mulf %125, %104 : vector<2x32xf32>
    %135 = arith.mulf %119, %127 : vector<2x32xf32>
    %136 = arith.addf %134, %135 : vector<2x32xf32>
    %137 = math.tanh %136 : vector<2x32xf32>
    %138 = arith.mulf %133, %137 : vector<2x32xf32>
    %c0_36 = arith.constant 0 : index
    %c3 = arith.constant 3 : index
    %c0_37 = arith.constant 0 : index
    %139 = vector.load %arg10[%c0_36, %c3, %c0_37] : memref<2x8x32xf32, #tpu.memory_space<vmem>>, vector<2x1x32xf32>
    %140 = vector.shape_cast %139 : vector<2x1x32xf32> to vector<2x32xf32>
    %141 = vector.shape_cast %138 : vector<2x32xf32> to vector<2x1x32xf32>
    tpu.vector_store %arg10[%c0_36, %c3, %c0_37], %141 {strides = array<i32>} : memref<2x8x32xf32, #tpu.memory_space<vmem>>, vector<2x1x32xf32>,
    %142 = vector.extract_strided_slice %10 {offsets = [0, 4, 0], sizes = [2, 1, 128], strides = [1, 1, 1]} : vector<2x8x128xf32> to vector<2x1x128xf32>
    %143 = vector.shape_cast %142 : vector<2x1x128xf32> to vector<2x128xf32>
    %cst_38 = arith.constant dense<0.000000e+00> : vector<2x128xf32>
    %144 = tpu.matmul %138, %11, %cst_38 {dimension_numbers = #tpu.dot_dimension_numbers<[1], [0], [0], [1], [0, 0, 1, 1], [], []>} : vector<2x32xf32>, vector<32x128xf32>, vector<2x128xf32> -> vector<2x128xf32>
    %145 = arith.addf %143, %144 : vector<2x128xf32>
    %146 = vector.extract_strided_slice %145 {offsets = [0, 0], sizes = [2, 32], strides = [1, 1]} : vector<2x128xf32> to vector<2x32xf32>
    %147 = arith.negf %146 : vector<2x32xf32>
    %148 = math.exp %147 : vector<2x32xf32>
    %cst_39 = arith.constant 1.000000e+00 : f32
    %149 = vector.broadcast %cst_39 : f32 to vector<2x32xf32>
    %150 = arith.addf %149, %148 : vector<2x32xf32>
    %151 = arith.divf %149, %150 : vector<2x32xf32>
    %152 = vector.extract_strided_slice %145 {offsets = [0, 32], sizes = [2, 32], strides = [1, 1]} : vector<2x128xf32> to vector<2x32xf32>
    %153 = arith.negf %152 : vector<2x32xf32>
    %154 = math.exp %153 : vector<2x32xf32>
    %cst_40 = arith.constant 1.000000e+00 : f32
    %155 = vector.broadcast %cst_40 : f32 to vector<2x32xf32>
    %156 = arith.addf %155, %154 : vector<2x32xf32>
    %157 = arith.divf %155, %156 : vector<2x32xf32>
    %158 = vector.extract_strided_slice %145 {offsets = [0, 64], sizes = [2, 32], strides = [1, 1]} : vector<2x128xf32> to vector<2x32xf32>
    %159 = math.tanh %158 : vector<2x32xf32>
    %160 = vector.extract_strided_slice %145 {offsets = [0, 96], sizes = [2, 32], strides = [1, 1]} : vector<2x128xf32> to vector<2x32xf32>
    %161 = arith.negf %160 : vector<2x32xf32>
    %162 = math.exp %161 : vector<2x32xf32>
    %cst_41 = arith.constant 1.000000e+00 : f32
    %163 = vector.broadcast %cst_41 : f32 to vector<2x32xf32>
    %164 = arith.addf %163, %162 : vector<2x32xf32>
    %165 = arith.divf %163, %164 : vector<2x32xf32>
    %166 = arith.mulf %157, %136 : vector<2x32xf32>
    %167 = arith.mulf %151, %159 : vector<2x32xf32>
    %168 = arith.addf %166, %167 : vector<2x32xf32>
    %169 = math.tanh %168 : vector<2x32xf32>
    %170 = arith.mulf %165, %169 : vector<2x32xf32>
    %c0_42 = arith.constant 0 : index
    %c4 = arith.constant 4 : index
    %c0_43 = arith.constant 0 : index
    %171 = vector.load %arg10[%c0_42, %c4, %c0_43] : memref<2x8x32xf32, #tpu.memory_space<vmem>>, vector<2x1x32xf32>
    %172 = vector.shape_cast %171 : vector<2x1x32xf32> to vector<2x32xf32>
    %173 = vector.shape_cast %170 : vector<2x32xf32> to vector<2x1x32xf32>
    tpu.vector_store %arg10[%c0_42, %c4, %c0_43], %173 {strides = array<i32>} : memref<2x8x32xf32, #tpu.memory_space<vmem>>, vector<2x1x32xf32>,
    %174 = vector.extract_strided_slice %10 {offsets = [0, 5, 0], sizes = [2, 1, 128], strides = [1, 1, 1]} : vector<2x8x128xf32> to vector<2x1x128xf32>
    %175 = vector.shape_cast %174 : vector<2x1x128xf32> to vector<2x128xf32>
    %cst_44 = arith.constant dense<0.000000e+00> : vector<2x128xf32>
    %176 = tpu.matmul %170, %11, %cst_44 {dimension_numbers = #tpu.dot_dimension_numbers<[1], [0], [0], [1], [0, 0, 1, 1], [], []>} : vector<2x32xf32>, vector<32x128xf32>, vector<2x128xf32> -> vector<2x128xf32>
    %177 = arith.addf %175, %176 : vector<2x128xf32>
    %178 = vector.extract_strided_slice %177 {offsets = [0, 0], sizes = [2, 32], strides = [1, 1]} : vector<2x128xf32> to vector<2x32xf32>
    %179 = arith.negf %178 : vector<2x32xf32>
    %180 = math.exp %179 : vector<2x32xf32>
    %cst_45 = arith.constant 1.000000e+00 : f32
    %181 = vector.broadcast %cst_45 : f32 to vector<2x32xf32>
    %182 = arith.addf %181, %180 : vector<2x32xf32>
    %183 = arith.divf %181, %182 : vector<2x32xf32>
    %184 = vector.extract_strided_slice %177 {offsets = [0, 32], sizes = [2, 32], strides = [1, 1]} : vector<2x128xf32> to vector<2x32xf32>
    %185 = arith.negf %184 : vector<2x32xf32>
    %186 = math.exp %185 : vector<2x32xf32>
    %cst_46 = arith.constant 1.000000e+00 : f32
    %187 = vector.broadcast %cst_46 : f32 to vector<2x32xf32>
    %188 = arith.addf %187, %186 : vector<2x32xf32>
    %189 = arith.divf %187, %188 : vector<2x32xf32>
    %190 = vector.extract_strided_slice %177 {offsets = [0, 64], sizes = [2, 32], strides = [1, 1]} : vector<2x128xf32> to vector<2x32xf32>
    %191 = math.tanh %190 : vector<2x32xf32>
    %192 = vector.extract_strided_slice %177 {offsets = [0, 96], sizes = [2, 32], strides = [1, 1]} : vector<2x128xf32> to vector<2x32xf32>
    %193 = arith.negf %192 : vector<2x32xf32>
    %194 = math.exp %193 : vector<2x32xf32>
    %cst_47 = arith.constant 1.000000e+00 : f32
    %195 = vector.broadcast %cst_47 : f32 to vector<2x32xf32>
    %196 = arith.addf %195, %194 : vector<2x32xf32>
    %197 = arith.divf %195, %196 : vector<2x32xf32>
    %198 = arith.mulf %189, %168 : vector<2x32xf32>
    %199 = arith.mulf %183, %191 : vector<2x32xf32>
    %200 = arith.addf %198, %199 : vector<2x32xf32>
    %201 = math.tanh %200 : vector<2x32xf32>
    %202 = arith.mulf %197, %201 : vector<2x32xf32>
    %c0_48 = arith.constant 0 : index
    %c5 = arith.constant 5 : index
    %c0_49 = arith.constant 0 : index
    %203 = vector.load %arg10[%c0_48, %c5, %c0_49] : memref<2x8x32xf32, #tpu.memory_space<vmem>>, vector<2x1x32xf32>
    %204 = vector.shape_cast %203 : vector<2x1x32xf32> to vector<2x32xf32>
    %205 = vector.shape_cast %202 : vector<2x32xf32> to vector<2x1x32xf32>
    tpu.vector_store %arg10[%c0_48, %c5, %c0_49], %205 {strides = array<i32>} : memref<2x8x32xf32, #tpu.memory_space<vmem>>, vector<2x1x32xf32>,
    %206 = vector.extract_strided_slice %10 {offsets = [0, 6, 0], sizes = [2, 1, 128], strides = [1, 1, 1]} : vector<2x8x128xf32> to vector<2x1x128xf32>
    %207 = vector.shape_cast %206 : vector<2x1x128xf32> to vector<2x128xf32>
    %cst_50 = arith.constant dense<0.000000e+00> : vector<2x128xf32>
    %208 = tpu.matmul %202, %11, %cst_50 {dimension_numbers = #tpu.dot_dimension_numbers<[1], [0], [0], [1], [0, 0, 1, 1], [], []>} : vector<2x32xf32>, vector<32x128xf32>, vector<2x128xf32> -> vector<2x128xf32>
    %209 = arith.addf %207, %208 : vector<2x128xf32>
    %210 = vector.extract_strided_slice %209 {offsets = [0, 0], sizes = [2, 32], strides = [1, 1]} : vector<2x128xf32> to vector<2x32xf32>
    %211 = arith.negf %210 : vector<2x32xf32>
    %212 = math.exp %211 : vector<2x32xf32>
    %cst_51 = arith.constant 1.000000e+00 : f32
    %213 = vector.broadcast %cst_51 : f32 to vector<2x32xf32>
    %214 = arith.addf %213, %212 : vector<2x32xf32>
    %215 = arith.divf %213, %214 : vector<2x32xf32>
    %216 = vector.extract_strided_slice %209 {offsets = [0, 32], sizes = [2, 32], strides = [1, 1]} : vector<2x128xf32> to vector<2x32xf32>
    %217 = arith.negf %216 : vector<2x32xf32>
    %218 = math.exp %217 : vector<2x32xf32>
    %cst_52 = arith.constant 1.000000e+00 : f32
    %219 = vector.broadcast %cst_52 : f32 to vector<2x32xf32>
    %220 = arith.addf %219, %218 : vector<2x32xf32>
    %221 = arith.divf %219, %220 : vector<2x32xf32>
    %222 = vector.extract_strided_slice %209 {offsets = [0, 64], sizes = [2, 32], strides = [1, 1]} : vector<2x128xf32> to vector<2x32xf32>
    %223 = math.tanh %222 : vector<2x32xf32>
    %224 = vector.extract_strided_slice %209 {offsets = [0, 96], sizes = [2, 32], strides = [1, 1]} : vector<2x128xf32> to vector<2x32xf32>
    %225 = arith.negf %224 : vector<2x32xf32>
    %226 = math.exp %225 : vector<2x32xf32>
    %cst_53 = arith.constant 1.000000e+00 : f32
    %227 = vector.broadcast %cst_53 : f32 to vector<2x32xf32>
    %228 = arith.addf %227, %226 : vector<2x32xf32>
    %229 = arith.divf %227, %228 : vector<2x32xf32>
    %230 = arith.mulf %221, %200 : vector<2x32xf32>
    %231 = arith.mulf %215, %223 : vector<2x32xf32>
    %232 = arith.addf %230, %231 : vector<2x32xf32>
    %233 = math.tanh %232 : vector<2x32xf32>
    %234 = arith.mulf %229, %233 : vector<2x32xf32>
    %c0_54 = arith.constant 0 : index
    %c6 = arith.constant 6 : index
    %c0_55 = arith.constant 0 : index
    %235 = vector.load %arg10[%c0_54, %c6, %c0_55] : memref<2x8x32xf32, #tpu.memory_space<vmem>>, vector<2x1x32xf32>
    %236 = vector.shape_cast %235 : vector<2x1x32xf32> to vector<2x32xf32>
    %237 = vector.shape_cast %234 : vector<2x32xf32> to vector<2x1x32xf32>
    tpu.vector_store %arg10[%c0_54, %c6, %c0_55], %237 {strides = array<i32>} : memref<2x8x32xf32, #tpu.memory_space<vmem>>, vector<2x1x32xf32>,
    %238 = vector.extract_strided_slice %10 {offsets = [0, 7, 0], sizes = [2, 1, 128], strides = [1, 1, 1]} : vector<2x8x128xf32> to vector<2x1x128xf32>
    %239 = vector.shape_cast %238 : vector<2x1x128xf32> to vector<2x128xf32>
    %cst_56 = arith.constant dense<0.000000e+00> : vector<2x128xf32>
    %240 = tpu.matmul %234, %11, %cst_56 {dimension_numbers = #tpu.dot_dimension_numbers<[1], [0], [0], [1], [0, 0, 1, 1], [], []>} : vector<2x32xf32>, vector<32x128xf32>, vector<2x128xf32> -> vector<2x128xf32>
    %241 = arith.addf %239, %240 : vector<2x128xf32>
    %242 = vector.extract_strided_slice %241 {offsets = [0, 0], sizes = [2, 32], strides = [1, 1]} : vector<2x128xf32> to vector<2x32xf32>
    %243 = arith.negf %242 : vector<2x32xf32>
    %244 = math.exp %243 : vector<2x32xf32>
    %cst_57 = arith.constant 1.000000e+00 : f32
    %245 = vector.broadcast %cst_57 : f32 to vector<2x32xf32>
    %246 = arith.addf %245, %244 : vector<2x32xf32>
    %247 = arith.divf %245, %246 : vector<2x32xf32>
    %248 = vector.extract_strided_slice %241 {offsets = [0, 32], sizes = [2, 32], strides = [1, 1]} : vector<2x128xf32> to vector<2x32xf32>
    %249 = arith.negf %248 : vector<2x32xf32>
    %250 = math.exp %249 : vector<2x32xf32>
    %cst_58 = arith.constant 1.000000e+00 : f32
    %251 = vector.broadcast %cst_58 : f32 to vector<2x32xf32>
    %252 = arith.addf %251, %250 : vector<2x32xf32>
    %253 = arith.divf %251, %252 : vector<2x32xf32>
    %254 = vector.extract_strided_slice %241 {offsets = [0, 64], sizes = [2, 32], strides = [1, 1]} : vector<2x128xf32> to vector<2x32xf32>
    %255 = math.tanh %254 : vector<2x32xf32>
    %256 = vector.extract_strided_slice %241 {offsets = [0, 96], sizes = [2, 32], strides = [1, 1]} : vector<2x128xf32> to vector<2x32xf32>
    %257 = arith.negf %256 : vector<2x32xf32>
    %258 = math.exp %257 : vector<2x32xf32>
    %cst_59 = arith.constant 1.000000e+00 : f32
    %259 = vector.broadcast %cst_59 : f32 to vector<2x32xf32>
    %260 = arith.addf %259, %258 : vector<2x32xf32>
    %261 = arith.divf %259, %260 : vector<2x32xf32>
    %262 = arith.mulf %253, %232 : vector<2x32xf32>
    %263 = arith.mulf %247, %255 : vector<2x32xf32>
    %264 = arith.addf %262, %263 : vector<2x32xf32>
    %265 = math.tanh %264 : vector<2x32xf32>
    %266 = arith.mulf %261, %265 : vector<2x32xf32>
    %c0_60 = arith.constant 0 : index
    %c7 = arith.constant 7 : index
    %c0_61 = arith.constant 0 : index
    %267 = vector.load %arg10[%c0_60, %c7, %c0_61] : memref<2x8x32xf32, #tpu.memory_space<vmem>>, vector<2x1x32xf32>
    %268 = vector.shape_cast %267 : vector<2x1x32xf32> to vector<2x32xf32>
    %269 = vector.shape_cast %266 : vector<2x32xf32> to vector<2x1x32xf32>
    tpu.vector_store %arg10[%c0_60, %c7, %c0_61], %269 {strides = array<i32>} : memref<2x8x32xf32, #tpu.memory_space<vmem>>, vector<2x1x32xf32>,
    %c0_62 = arith.constant 0 : index
    %c0_63 = arith.constant 0 : index
    %270 = vector.load %arg8[%c0_62, %c0_63] : memref<2x32xf32, #tpu.memory_space<vmem>>, vector<2x32xf32>
    tpu.vector_store %arg8[%c0_62, %c0_63], %266 {strides = array<i32>} : memref<2x32xf32, #tpu.memory_space<vmem>>, vector<2x32xf32>,
    %c0_64 = arith.constant 0 : index
    %c0_65 = arith.constant 0 : index
    %271 = vector.load %arg9[%c0_64, %c0_65] : memref<2x32xf32, #tpu.memory_space<vmem>>, vector<2x32xf32>
    tpu.vector_store %arg9[%c0_64, %c0_65], %264 {strides = array<i32>} : memref<2x32xf32, #tpu.memory_space<vmem>>, vector<2x32xf32>,
    %c0_66 = arith.constant 0 : index
    %c0_67 = arith.constant 0 : index
    %c0_68 = arith.constant 0 : index
    %272 = vector.load %arg10[%c0_66, %c0_67, %c0_68] : memref<2x8x32xf32, #tpu.memory_space<vmem>>, vector<2x8x32xf32>
    %273 = vector.shape_cast %272 : vector<2x8x32xf32> to vector<16x32xf32>
    %c0_69 = arith.constant 0 : index
    %c0_70 = arith.constant 0 : index
    %274 = vector.load %arg5[%c0_69, %c0_70] : memref<32x4xf32, #tpu.memory_space<vmem>>, vector<32x4xf32>
    %cst_71 = arith.constant dense<0.000000e+00> : vector<16x4xf32>
    %275 = tpu.matmul %273, %274, %cst_71 {dimension_numbers = #tpu.dot_dimension_numbers<[1], [0], [0], [1], [0, 0, 1, 1], [], []>} : vector<16x32xf32>, vector<32x4xf32>, vector<16x4xf32> -> vector<16x4xf32>
    %c0_72 = arith.constant 0 : index
    %c0_73 = arith.constant 0 : index
    %276 = vector.load %arg6[%c0_72, %c0_73] : memref<1x4xf32, #tpu.memory_space<vmem>>, vector<1x4xf32>
    %277 = vector.broadcast %276 : vector<1x4xf32> to vector<16x4xf32>
    %278 = arith.addf %275, %277 : vector<16x4xf32>
    %279 = vector.shape_cast %278 : vector<16x4xf32> to vector<2x8x4xf32>
    %c0_74 = arith.constant 0 : index
    %c0_75 = arith.constant 0 : index
    %c0_76 = arith.constant 0 : index
    %280 = vector.load %arg7[%c0_74, %c0_75, %c0_76] : memref<2x8x4xf32, #tpu.memory_space<vmem>>, vector<2x8x4xf32>
    tpu.vector_store %arg7[%c0_74, %c0_75, %c0_76], %279 {strides = array<i32>} : memref<2x8x4xf32, #tpu.memory_space<vmem>>, vector<2x8x4xf32>,
    return
  }
  func.func @transform_0(%arg0: i32) -> (i32, i32, i32) {
    %c0_i32 = arith.constant 0 : i32
    %c0_i32_0 = arith.constant 0 : i32
    %c0_i32_1 = arith.constant 0 : i32
    return %c0_i32, %arg0, %c0_i32_0 : i32, i32, i32
  }
  func.func @transform_1(%arg0: i32) -> (i32, i32) {
    %c0_i32 = arith.constant 0 : i32
    %c0_i32_0 = arith.constant 0 : i32
    %c0_i32_1 = arith.constant 0 : i32
    return %c0_i32, %c0_i32_0 : i32, i32
  }
  func.func @transform_2(%arg0: i32) -> (i32, i32) {
    %c0_i32 = arith.constant 0 : i32
    %c0_i32_0 = arith.constant 0 : i32
    %c0_i32_1 = arith.constant 0 : i32
    return %c0_i32, %c0_i32_0 : i32, i32
  }
  func.func @transform_3(%arg0: i32) -> (i32, i32) {
    %c0_i32 = arith.constant 0 : i32
    %c0_i32_0 = arith.constant 0 : i32
    %c0_i32_1 = arith.constant 0 : i32
    return %c0_i32, %c0_i32_0 : i32, i32
  }
  func.func @transform_4(%arg0: i32) -> (i32, i32) {
    %c0_i32 = arith.constant 0 : i32
    %c0_i32_0 = arith.constant 0 : i32
    %c0_i32_1 = arith.constant 0 : i32
    return %c0_i32, %c0_i32_0 : i32, i32
  }
  func.func @transform_5(%arg0: i32) -> (i32, i32) {
    %c0_i32 = arith.constant 0 : i32
    %c0_i32_0 = arith.constant 0 : i32
    %c0_i32_1 = arith.constant 0 : i32
    return %c0_i32, %c0_i32_0 : i32, i32
  }
  func.func @transform_6(%arg0: i32) -> (i32, i32, i32) {
    %c0_i32 = arith.constant 0 : i32
    %c0_i32_0 = arith.constant 0 : i32
    %c0_i32_1 = arith.constant 0 : i32
    return %c0_i32, %arg0, %c0_i32_0 : i32, i32, i32
  }
}

</mosaic_0001>

<bundles_post_ra>
// kernel: lstm_forward.1
= control target key start
LH: loop header
LB: loop body
LE: loop exit
PB: predicated region body
PF: predicated region fallthrough
CT: control target
= control target key end

     0   :  { %11 = vsyncpa [#allocation6], 0  ;;  %s1748_s0 = inlined_call_operand.hbm [shape: f32[2,8,8], index: 0, kind: input, shape index: {}]   ;;  %s1749_s1 = inlined_call_operand.hbm [shape: f32[8,128], index: 1, kind: input, shape index: {}]   ;;  %s1750_s2 = inlined_call_operand.vmem [shape: f32[32,128], index: 2, kind: input, shape index: {}]   ;;  %s1751_s3 = inlined_call_operand.vmem [shape: f32[1,128], index: 3, kind: input, shape index: {}]   ;;  %s1752_s4 = inlined_call_operand.vmem [shape: f32[32,4], index: 4, kind: input, shape index: {}]   ;;  %s1753_s5 = inlined_call_operand.vmem [shape: f32[1,4], index: 5, kind: input, shape index: {}]   ;;  %s1754_s6 = inlined_call_operand.vmem [shape: f32[2,8,4], index: 6, kind: output, shape index: {}]  }
   0x1   :  { %s17_s23 = sshll.u32 %s1748_s0, 4  ;;  %s18_s23 = int_to_ptr.hbm [resolvable:$true] %s17_s23 }
   0x2   :  { %12 = vsyncpa [#allocation8], 0  ;;  %s1382_s24 = smov [#allocation5]   ;;  %s31_s28 = sshll.u32 %s1749_s1, 4  ;;  %s32_s28 = int_to_ptr.hbm [resolvable:$true] %s31_s28 }
   0x3   :  { %s19_s25 = sshll.u32 %s1382_s24, 4  ;;  %s1383_s29 = smov 128   ;;  %s20_s25 = int_to_ptr.vmem [resolvable:$true] %s19_s25 }
   0x4   :  { %s1384_s30 = smov 8   ;;  %s1385_s7 = smov [#allocation7]  }
   0x5   :  { %25 = dma.hbm_to_vmem [thread:$0]  %s18_s23, 256, %s20_s25, [#allocation6], %s1383_s29, %s1383_s29, %s1384_s30  }
   0x6   :  { %s33_s8 = sshll.u32 %s1385_s7, 4  ;;  %s34_s8 = int_to_ptr.vmem [resolvable:$true] %s33_s8 }
   0x7   :  { %36 = dma.hbm_to_vmem [thread:$0]  %s32_s28, 128, %s34_s8, [#allocation8]  }
   0x8   :  { %1378 = dma.done.wait [#allocation6], 256  }
   0x9   :  { %1379 = vsyncadd [#allocation6], 4294967040 }
   0xa   :  { %1380 = dma.done.wait [#allocation8], 128  }
   0xb   :  { %1381 = vsyncadd [#allocation8], 4294967168  ;;  %vm57_vm0 = vcmask 254976   ;;  %v1386_v0 = vmov 0.0   ;;  %vm67_vm1 = vcmask 64512   ;;  %v62_v1 = vld [vmem:[#allocation7] sm:$0xff] }
   0xc   :  { %58 = vst.msk [vmem:[#allocation2] sm:$0x3] %vm57_vm0, %v1386_v0  ;;  %v1434_v2 = vld [vmem:[%s1750_s2 + $0x18] sm:$0xff]  ;;  %89 = vmatpush.msra.mxu0 %v62_v1  ;;  %v1440_v4 = vld [vmem:[%s1750_s2 + $0x10] sm:$0xff]  ;;  %v1446_v5 = vld [vmem:[%s1750_s2 + $0x8] sm:$0xff]  ;;  %vm103_vm2 = vcmask 261120  }
   0xd   :  { %59 = vst.msk [vmem:[#allocation3] sm:$0x3] %vm57_vm0, %v1386_v0  ;;  %v60_v3 = vld [vmem:[#allocation5] sm:$0xff]  ;;  %119 = vmatpush.msra.mxu1 %v1434_v2  ;;  %245 = vmatpush.msra.mxu3 %v1434_v2  ;;  %v1454_v8 = vld [vmem:[%s1750_s2] sm:$0xff]  ;;  %s1387_s15 = smov 32   ;;  %s1388_s17 = smov 64  }
   0xe   :  { %1164 = vmatmul.msk.f32.vlgmr.msra.gmra.mxu0 %vm67_vm1, %v60_v3  ;;  %618 = vmatpush.msra.mxu2 %v1434_v2  ;;  %v61_v10 = vld [vmem:[#allocation5 + $0x8] sm:$0xff]  ;;  %vm227_vm11 = vcmask 1041409  }
   0xf   :  { %120 = vmatpush.msra.mxu1 %v1440_v4  ;;  %246 = vmatpush.msra.mxu3 %v1440_v4  ;;  %v1200_v13 = vld [vmem:[%s1751_s3] ss:$0 sm:$0xff]  ;;  %s1389_s3 = smov 96  }
  0x10   :  { %868 = vmatpush.msrb.mxu0 %v1434_v2  ;;  %619 = vmatpush.msra.mxu2 %v1440_v4 }
  0x11   :  { %121 = vmatpush.msra.mxu1 %v1446_v5  ;;  %247 = vmatpush.msra.mxu3 %v1446_v5 }
  0x12   :  { %869 = vmatpush.msrb.mxu0 %v1440_v4  ;;  %620 = vmatpush.msra.mxu2 %v1446_v5 }
  0x13   :  { %v101_v9 = vld [vmem:[#allocation2] sm:$0x3]  ;;  %122 = vmatpush.msra.mxu1 %v1454_v8  ;;  %248 = vmatpush.msra.mxu3 %v1454_v8 }
  0x14   :  { %v102_v6 = vld [vmem:[#allocation3] sm:$0x3]  ;;  %1166 = vmatmul.msk.f32.vlgmr.msra.gmra.mxu1 %vm103_vm2, %v101_v9  ;;  %621 = vmatpush.msra.mxu2 %v1454_v8 }
  0x15   :  { %v174_v7 = vrot.slane %v102_v6, 1  ;;  %368 = vmatpush.msrb.mxu3 %v1434_v2  ;;  %493 = vmatpush.msrb.mxu1 %v1434_v2 }
  0x16   :  { %1165 = vmatmul.msk.f32.gmra.mxu0 %vm67_vm1, %v61_v10 }
  0x17   :  { %177 = vrot.lane.b32.xlu1 %v174_v7, %s1387_s15  ;;  %369 = vmatpush.msrb.mxu3 %v1440_v4 }
  0x18   :  { %494 = vmatpush.msrb.mxu1 %v1440_v4  ;;  %870 = vmatpush.msrb.mxu0 %v1446_v5 }
  0x19   :  { %370 = vmatpush.msrb.mxu3 %v1446_v5 }
  0x1a   :  { %495 = vmatpush.msrb.mxu1 %v1446_v5  ;;  %871 = vmatpush.msrb.mxu0 %v1454_v8 }
  0x1b   :  { %371 = vmatpush.msrb.mxu3 %v1454_v8 }
  0x1c   :  { %496 = vmatpush.msrb.mxu1 %v1454_v8 }
  0x1e   :  { %993 = vmatpush.msra.mxu1 %v1434_v2 }
  0x1f   :  { %175 = vrot.lane.b32.xlu1 %v102_v6, %s1387_s15 }
  0x20   :  { %994 = vmatpush.msra.mxu1 %v1440_v4 }
  0x22   :  { %995 = vmatpush.msra.mxu1 %v1446_v5 }
  0x24   :  { %996 = vmatpush.msra.mxu1 %v1454_v8 }
  0x89   :  { %v178_v52 = vpop.permute.xlu1 %177 }
  0x8b   :  { %v91_v11 = vpop.f32.mrf.mxu0 }
  0x8c   :  { %v1490_v18 = vadd.f32 %v1200_v13, %v91_v11 }
  0x91   :  { %v124_v12 = vpop.f32.mrf.mxu1  ;;  %v176_v56 = vpop.permute.xlu1 %175 }
  0x92   :  { %v128_v14 = vrot.slane %v124_v12, 1  ;;  %v131_v19 = vadd.f32 %v124_v12, %v1490_v18 }
  0x93   :  { %v94_v15 = vpop.f32.mrf.mxu0 }
  0x94   :  { %v1487_v16 = vadd.f32 %v1200_v13, %v94_v15  ;;  %v1167_v23 = vmul.f32 -1.442695, %v131_v19 }
  0x96   :  { %v132_v17 = vadd.f32 %v128_v14, %v1487_v16 }
  0x98   :  { %1202 = vtanh.f32 %v132_v17  ;;  %v1168_v22 = vmul.f32 -1.442695, %v132_v17 }
  0x99   :  { %1204 = vtanh.f32 %v131_v19 }
  0x9a   :  { %1206 = vpow2.f32 %v1168_v22 }
  0x9b   :  { %1208 = vpow2.f32 %v1167_v23 }
  0x9e   :  { %v1203_v20 = vpop.eup %1202 }
  0x9f   :  { %187 = vrot.lane.b32.xlu0 %v1203_v20, %s1388_s17  ;;  %v1205_v21 = vpop.eup %1204 }
  0xa0   :  { %v1207_v24 = vpop.eup %1206 }
  0xa1   :  { %v140_v25 = vadd.f32 1.0, %v1207_v24  ;;  %v1209_v26 = vpop.eup %1208 }
  0xa2   :  { %v139_v27 = vadd.f32 1.0, %v1209_v26 }
  0xa3   :  { %1210 = vrcp.f32 %v140_v25  ;;  %v167_v36 = vand.u32 2147483648, %v140_v25  ;;  %vm161_vm4 = vweird.f32 %v140_v25  ;;  %v165_v37 = vand.u32 2147483647, %v140_v25 }
  0xa4   :  { %1212 = vrcp.f32 %v139_v27  ;;  %v152_v45 = vand.u32 2147483648, %v139_v27  ;;  %vm146_vm8 = vweird.f32 %v139_v27  ;;  %v150_v46 = vand.u32 2147483647, %v139_v27 }
  0xa5   :  { %v168_v40 = vor.u32 1.1754944e-38, %v167_v36  ;;  %vm166_vm6 = vcmp.eq.f32.partialorder %v165_v37, 8.507059e+37 }
  0xa6   :  { %v153_v48 = vor.u32 1.1754944e-38, %v152_v45  ;;  %vm151_vm10 = vcmp.eq.f32.partialorder %v150_v46, 8.507059e+37 }
  0xa7   :  { %185 = vrot.lane.b32.xlu0 %v1205_v21, %s1388_s17 }
  0xa9   :  { %v1211_v28 = vpop.eup %1210 }
  0xaa   :  { %v157_v29 = vmul.f32 %v1211_v28, %v140_v25  ;;  %v1213_v31 = vpop.eup %1212  ;;  %vm162_vm3 = vweird.f32 %v1211_v28 }
  0xab   :  { %v142_v33 = vmul.f32 %v1213_v31, %v139_v27  ;;  %vm163_vm5 = vmor %vm161_vm4, %vm162_vm3  ;;  %vm147_vm7 = vweird.f32 %v1213_v31 }
  0xac   :  { %v158_v30 = vsub.f32 1.0, %v157_v29  ;;  %vm148_vm9 = vmor %vm146_vm8, %vm147_vm7 }
  0xad   :  { %v143_v35 = vsub.f32 1.0, %v142_v33 }
  0xae   :  { %v159_v32 = vmul.f32 %v1211_v28, %v158_v30 }
  0xaf   :  { %v144_v39 = vmul.f32 %v1213_v31, %v143_v35 }
  0xb0   :  { %v160_v34 = vadd.f32 %v1211_v28, %v159_v32 }
  0xb1   :  { %v145_v43 = vadd.f32 %v1213_v31, %v144_v39 }
  0xb2   :  { %v164_v38 = vsel %vm163_vm5, %v1211_v28, %v160_v34 }
  0xb3   :  { %v169_v41 = vsel %vm166_vm6, %v168_v40, %v164_v38  ;;  %v149_v47 = vsel %vm148_vm9, %v1213_v31, %v145_v43 }
  0xb4   :  { %v154_v49 = vsel %vm151_vm10, %v153_v48, %v149_v47  ;;  %v182_v53 = vmul.f32 %v178_v52, %v169_v41 }
  0xb5   :  { %v181_v57 = vmul.f32 %v176_v56, %v154_v49 }
 0x111   :  { %v188_v42 = vpop.permute.xlu0 %187 }
 0x112   :  { %v192_v44 = vmul.f32 %v188_v42, %v169_v41 }
 0x114   :  { %197 = vrot.lane.b32.xlu2 %v192_v44, %s1387_s15 }
 0x119   :  { %v186_v50 = vpop.permute.xlu0 %185 }
 0x11a   :  { %v191_v51 = vmul.f32 %v186_v50, %v154_v49 }
 0x11c   :  { %195 = vrot.lane.b32.xlu2 %v191_v51, %s1387_s15 }
 0x16e   :  { %v198_v54 = vpop.permute.xlu2 %197 }
 0x16f   :  { %v1497_v55 = vadd.f32 %v198_v54, %v182_v53 }
 0x171   :  { %1214 = vtanh.f32 %v1497_v55  ;;  %v302_v48 = vrot.slane %v1497_v55, 7 }
 0x176   :  { %v196_v58 = vpop.permute.xlu2 %195 }
 0x177   :  { %v1215_v59 = vpop.eup %1214  ;;  %v1500_v60 = vadd.f32 %v196_v58, %v181_v57 }
 0x178   :  { %209 = vrot.lane.b32.xlu0 %v1215_v59, %s1388_s17 }
 0x179   :  { %1216 = vtanh.f32 %v1500_v60  ;;  %v301_v43 = vrot.slane %v1500_v60, 7 }
 0x17f   :  { %v1217_v61 = vpop.eup %1216 }
 0x180   :  { %207 = vrot.lane.b32.xlu1 %v1217_v61, %s1388_s17 }
 0x1ea   :  { %v210_v62 = vpop.permute.xlu0 %209 }
 0x1eb   :  { %v1505_v63 = vmul.f32 %v210_v62, %v169_v41 }
 0x1ed   :  { %v226_v1 = vrot.slane %v1505_v63, 7 }
 0x1f2   :  { %v208_v0 = vpop.permute.xlu1 %207 }
 0x1f3   :  { %v1508_v3 = vmul.f32 %v208_v0, %v154_v49 }
 0x1f5   :  { %v228_v6 = vsel %vm227_vm11, %v226_v1, %v1508_v3 }
 0x1f6   :  { %229 = vrot.lane.b32.xlu2 %v228_v6, %s1387_s15 }
 0x250   :  { %v230_v7 = vpop.permute.xlu2 %229 }
 0x251   :  { %1169 = vmatmul.msk.f32.vlgmr.msra.gmra.mxu3 %vm103_vm2, %v230_v7 }
 0x252   :  { %743 = vmatpush.msra.mxu3 %v1434_v2 }
 0x254   :  { %744 = vmatpush.msra.mxu3 %v1440_v4 }
 0x256   :  { %745 = vmatpush.msra.mxu3 %v1446_v5 }
 0x258   :  { %746 = vmatpush.msra.mxu3 %v1454_v8 }
 0x2d4   :  { %v250_v9 = vpop.f32.mrf.mxu3 }
 0x2d5   :  { %v254_v10 = vrot.slane %v250_v9, 7  ;;  %v258_v11 = vadd.f32 %v250_v9, %v1487_v16 }
 0x2d7   :  { %v257_v12 = vadd.f32 %v254_v10, %v1490_v18  ;;  %1218 = vtanh.f32 %v258_v11  ;;  %v1171_v2 = vmul.f32 -1.442695, %v258_v11 }
 0x2d9   :  { %1220 = vtanh.f32 %v257_v12  ;;  %v1170_v4 = vmul.f32 -1.442695, %v257_v12 }
 0x2da   :  { %1222 = vpow2.f32 %v1171_v2 }
 0x2db   :  { %1224 = vpow2.f32 %v1170_v4 }
 0x2dd   :  { %v1219_v13 = vpop.eup %1218 }
 0x2de   :  { %311 = vrot.lane.b32.xlu1 %v1219_v13, %s1388_s17 }
 0x2df   :  { %v1221_v14 = vpop.eup %1220 }
 0x2e0   :  { %309 = vrot.lane.b32.xlu0 %v1221_v14, %s1388_s17  ;;  %v1223_v5 = vpop.eup %1222 }
 0x2e1   :  { %v1225_v8 = vpop.eup %1224  ;;  %v266_v15 = vadd.f32 1.0, %v1223_v5 }
 0x2e2   :  { %v265_v17 = vadd.f32 1.0, %v1225_v8 }
 0x2e3   :  { %1226 = vrcp.f32 %v266_v15  ;;  %v293_v28 = vand.u32 2147483648, %v266_v15  ;;  %vm287_vm13 = vweird.f32 %v266_v15  ;;  %v291_v29 = vand.u32 2147483647, %v266_v15 }
 0x2e4   :  { %1228 = vrcp.f32 %v265_v17  ;;  %v278_v32 = vand.u32 2147483648, %v265_v17  ;;  %vm272_vm0 = vweird.f32 %v265_v17  ;;  %v276_v34 = vand.u32 2147483647, %v265_v17 }
 0x2e5   :  { %v294_v33 = vor.u32 1.1754944e-38, %v293_v28  ;;  %vm292_vm1 = vcmp.eq.f32.partialorder %v291_v29, 8.507059e+37 }
 0x2e6   :  { %v279_v39 = vor.u32 1.1754944e-38, %v278_v32  ;;  %vm277_vm4 = vcmp.eq.f32.partialorder %v276_v34, 8.507059e+37 }
 0x2e9   :  { %v1227_v19 = vpop.eup %1226 }
 0x2ea   :  { %v1229_v20 = vpop.eup %1228  ;;  %v283_v21 = vmul.f32 %v1227_v19, %v266_v15  ;;  %vm288_vm12 = vweird.f32 %v1227_v19 }
 0x2eb   :  { %v268_v22 = vmul.f32 %v1229_v20, %v265_v17  ;;  %vm289_vm14 = vmor %vm287_vm13, %vm288_vm12  ;;  %vm273_vm15 = vweird.f32 %v1229_v20 }
 0x2ec   :  { %v284_v23 = vsub.f32 1.0, %v283_v21  ;;  %vm274_vm3 = vmor %vm272_vm0, %vm273_vm15 }
 0x2ed   :  { %v269_v24 = vsub.f32 1.0, %v268_v22 }
 0x2ee   :  { %v285_v25 = vmul.f32 %v1227_v19, %v284_v23 }
 0x2ef   :  { %v270_v26 = vmul.f32 %v1229_v20, %v269_v24 }
 0x2f0   :  { %v286_v27 = vadd.f32 %v1227_v19, %v285_v25 }
 0x2f1   :  { %v271_v30 = vadd.f32 %v1229_v20, %v270_v26 }
 0x2f2   :  { %v290_v31 = vsel %vm289_vm14, %v1227_v19, %v286_v27 }
 0x2f3   :  { %v295_v36 = vsel %vm292_vm1, %v294_v33, %v290_v31  ;;  %v275_v37 = vsel %vm274_vm3, %v1229_v20, %v271_v30 }
 0x2f4   :  { %v280_v41 = vsel %vm277_vm4, %v279_v39, %v275_v37  ;;  %v306_v49 = vmul.f32 %v302_v48, %v295_v36 }
 0x2f5   :  { %v305_v44 = vmul.f32 %v301_v43, %v280_v41 }
 0x350   :  { %v312_v35 = vpop.permute.xlu1 %311 }
 0x351   :  { %v316_v38 = vmul.f32 %v312_v35, %v295_v36 }
 0x352   :  { %v310_v40 = vpop.permute.xlu0 %309 }
 0x353   :  { %321 = vrot.lane.b32.xlu0 %v316_v38, %s1387_s15  ;;  %v315_v42 = vmul.f32 %v310_v40, %v280_v41 }
 0x355   :  { %319 = vrot.lane.b32.xlu2 %v315_v42, %s1387_s15 }
 0x3af   :  { %v320_v45 = vpop.permute.xlu2 %319 }
 0x3b0   :  { %v1525_v46 = vadd.f32 %v320_v45, %v305_v44 }
 0x3b2   :  { %1230 = vtanh.f32 %v1525_v46  ;;  %v425_v42 = vrot.slane %v1525_v46, 7 }
 0x3b8   :  { %v1231_v47 = vpop.eup %1230 }
 0x3b9   :  { %331 = vrot.lane.b32.xlu1 %v1231_v47, %s1388_s17 }
 0x3c5   :  { %v322_v50 = vpop.permute.xlu0 %321 }
 0x3c6   :  { %v1530_v51 = vadd.f32 %v322_v50, %v306_v49 }
 0x3c8   :  { %1232 = vtanh.f32 %v1530_v51  ;;  %v426_v37 = vrot.slane %v1530_v51, 7 }
 0x3ce   :  { %v1233_v52 = vpop.eup %1232 }
 0x3cf   :  { %333 = vrot.lane.b32.xlu2 %v1233_v52, %s1388_s17 }
 0x429   :  { %v334_v53 = vpop.permute.xlu2 %333 }
 0x42a   :  { %v1536_v57 = vmul.f32 %v334_v53, %v295_v36 }
 0x42b   :  { %v332_v54 = vpop.permute.xlu1 %331 }
 0x42c   :  { %v1534_v56 = vmul.f32 %v332_v54, %v280_v41 }
 0x42e   :  { %v350_v58 = vrot.slane %v1534_v56, 1 }
 0x430   :  { %v351_v55 = vsel %vm227_vm11, %v1536_v57, %v350_v58 }
 0x431   :  { %352 = vrot.lane.b32.xlu0 %v351_v55, %s1387_s15 }
 0x4a3   :  { %v353_v59 = vpop.permute.xlu0 %352 }
 0x4a4   :  { %1172 = vmatmul.msk.f32.vlgmr.msrb.gmra.mxu3 %vm103_vm2, %v353_v59 }
 0x527   :  { %v373_v60 = vpop.f32.mrf.mxu3 }
 0x528   :  { %v377_v61 = vrot.slane %v373_v60, 6  ;;  %v378_v62 = vrot.slane %v373_v60, 7 }
 0x52a   :  { %v381_v0 = vadd.f32 %v377_v61, %v1490_v18  ;;  %v382_v1 = vadd.f32 %v378_v62, %v1487_v16 }
 0x52c   :  { %1234 = vtanh.f32 %v381_v0  ;;  %v1174_v9 = vmul.f32 -1.442695, %v382_v1  ;;  %v1173_v13 = vmul.f32 -1.442695, %v381_v0 }
 0x52d   :  { %1236 = vtanh.f32 %v382_v1 }
 0x52e   :  { %1238 = vpow2.f32 %v1174_v9 }
 0x532   :  { %v1235_v6 = vpop.eup %1234 }
 0x533   :  { %v1237_v7 = vpop.eup %1236  ;;  %433 = vrot.lane.b32.xlu1 %v1235_v6, %s1388_s17 }
 0x534   :  { %435 = vrot.lane.b32.xlu2 %v1237_v7, %s1388_s17  ;;  %v1239_v10 = vpop.eup %1238 }
 0x535   :  { %v390_v11 = vadd.f32 1.0, %v1239_v10 }
 0x537   :  { %1240 = vrcp.f32 %v390_v11  ;;  %v417_v17 = vand.u32 2147483648, %v390_v11  ;;  %vm411_vm6 = vweird.f32 %v390_v11  ;;  %v415_v19 = vand.u32 2147483647, %v390_v11 }
 0x538   :  { %1242 = vpow2.f32 %v1173_v13 }
 0x539   :  { %v418_v21 = vor.u32 1.1754944e-38, %v417_v17  ;;  %vm416_vm8 = vcmp.eq.f32.partialorder %v415_v19, 8.507059e+37 }
 0x53d   :  { %v1241_v12 = vpop.eup %1240 }
 0x53e   :  { %v407_v14 = vmul.f32 %v1241_v12, %v390_v11  ;;  %v1243_v4 = vpop.eup %1242  ;;  %vm412_vm5 = vweird.f32 %v1241_v12 }
 0x53f   :  { %v389_v8 = vadd.f32 1.0, %v1243_v4  ;;  %vm413_vm7 = vmor %vm411_vm6, %vm412_vm5 }
 0x540   :  { %v408_v2 = vsub.f32 1.0, %v407_v14 }
 0x541   :  { %1244 = vrcp.f32 %v389_v8  ;;  %v402_v30 = vand.u32 2147483648, %v389_v8  ;;  %vm396_vm10 = vweird.f32 %v389_v8  ;;  %v400_v31 = vand.u32 2147483647, %v389_v8 }
 0x542   :  { %v409_v5 = vmul.f32 %v1241_v12, %v408_v2 }
 0x543   :  { %v403_v33 = vor.u32 1.1754944e-38, %v402_v30  ;;  %vm401_vm13 = vcmp.eq.f32.partialorder %v400_v31, 8.507059e+37 }
 0x544   :  { %v410_v15 = vadd.f32 %v1241_v12, %v409_v5 }
 0x546   :  { %v414_v20 = vsel %vm413_vm7, %v1241_v12, %v410_v15 }
 0x547   :  { %v419_v23 = vsel %vm416_vm8, %v418_v21, %v414_v20  ;;  %v1245_v24 = vpop.eup %1244 }
 0x548   :  { %v392_v26 = vmul.f32 %v1245_v24, %v389_v8  ;;  %vm397_vm9 = vweird.f32 %v1245_v24  ;;  %v430_v38 = vmul.f32 %v426_v37, %v419_v23 }
 0x549   :  { %vm398_vm12 = vmor %vm396_vm10, %vm397_vm9 }
 0x54a   :  { %v393_v27 = vsub.f32 1.0, %v392_v26 }
 0x54c   :  { %v394_v28 = vmul.f32 %v1245_v24, %v393_v27 }
 0x54e   :  { %v395_v29 = vadd.f32 %v1245_v24, %v394_v28 }
 0x550   :  { %v399_v32 = vsel %vm398_vm12, %v1245_v24, %v395_v29 }
 0x551   :  { %v404_v35 = vsel %vm401_vm13, %v403_v33, %v399_v32 }
 0x552   :  { %v429_v43 = vmul.f32 %v425_v42, %v404_v35 }
 0x58e   :  { %v436_v22 = vpop.permute.xlu2 %435 }
 0x58f   :  { %v440_v25 = vmul.f32 %v436_v22, %v419_v23 }
 0x591   :  { %445 = vrot.lane.b32.xlu1 %v440_v25, %s1387_s15 }
 0x5a5   :  { %v434_v34 = vpop.permute.xlu1 %433 }
 0x5a6   :  { %v439_v36 = vmul.f32 %v434_v34, %v404_v35 }
 0x5a8   :  { %443 = vrot.lane.b32.xlu0 %v439_v36, %s1387_s15 }
 0x603   :  { %v446_v39 = vpop.permute.xlu1 %445 }
 0x604   :  { %v1550_v40 = vadd.f32 %v446_v39, %v430_v38 }
 0x606   :  { %1246 = vtanh.f32 %v1550_v40 }
 0x60c   :  { %v1247_v41 = vpop.eup %1246 }
 0x60d   :  { %457 = vrot.lane.b32.xlu0 %v1247_v41, %s1388_s17 }
 0x61a   :  { %v444_v44 = vpop.permute.xlu0 %443 }
 0x61b   :  { %v1555_v45 = vadd.f32 %v444_v44, %v429_v43 }
 0x61d   :  { %1248 = vtanh.f32 %v1555_v45  ;;  %v550_v34 = vrot.slane %v1555_v45, 7 }
 0x623   :  { %v1249_v47 = vpop.eup %1248 }
 0x624   :  { %455 = vrot.lane.b32.xlu2 %v1249_v47, %s1388_s17 }
 0x67e   :  { %v456_v48 = vpop.permute.xlu2 %455 }
 0x67f   :  { %v458_v49 = vpop.permute.xlu0 %457  ;;  %v1559_v50 = vmul.f32 %v456_v48, %v404_v35  ;;  %v551_v35 = vrot.slane %v1550_v40, 7 }
 0x680   :  { %v1561_v51 = vmul.f32 %v458_v49, %v419_v23 }
 0x681   :  { %v474_v52 = vrot.slane %v1559_v50, 2 }
 0x682   :  { %v475_v53 = vrot.slane %v1561_v51, 1 }
 0x684   :  { %v476_v46 = vsel %vm227_vm11, %v475_v53, %v474_v52 }
 0x685   :  { %477 = vrot.lane.b32.xlu1 %v476_v46, %s1387_s15 }
 0x6f7   :  { %v478_v54 = vpop.permute.xlu1 %477 }
 0x6f8   :  { %1175 = vmatmul.msk.f32.vlgmr.msrb.gmra.mxu1 %vm103_vm2, %v478_v54 }
 0x775   :  { %v498_v58 = vpop.f32.mrf.mxu1 }
 0x776   :  { %v502_v55 = vrot.slane %v498_v58, 5  ;;  %v503_v59 = vrot.slane %v498_v58, 6 }
 0x778   :  { %v506_v60 = vadd.f32 %v502_v55, %v1490_v18  ;;  %v507_v61 = vadd.f32 %v503_v59, %v1487_v16 }
 0x77a   :  { %1250 = vtanh.f32 %v506_v60  ;;  %v1176_v1 = vmul.f32 -1.442695, %v506_v60  ;;  %v1177_v10 = vmul.f32 -1.442695, %v507_v61 }
 0x77b   :  { %1252 = vtanh.f32 %v507_v61 }
 0x77c   :  { %1254 = vpow2.f32 %v1176_v1 }
 0x780   :  { %v1251_v62 = vpop.eup %1250 }
 0x781   :  { %v1253_v0 = vpop.eup %1252  ;;  %558 = vrot.lane.b32.xlu2 %v1251_v62, %s1388_s17 }
 0x782   :  { %560 = vrot.lane.b32.xlu0 %v1253_v0, %s1388_s17  ;;  %v1255_v6 = vpop.eup %1254 }
 0x783   :  { %v514_v7 = vadd.f32 1.0, %v1255_v6 }
 0x785   :  { %1256 = vrcp.f32 %v514_v7  ;;  %v527_v5 = vand.u32 2147483648, %v514_v7  ;;  %vm521_vm15 = vweird.f32 %v514_v7  ;;  %v525_v8 = vand.u32 2147483647, %v514_v7 }
 0x786   :  { %1258 = vpow2.f32 %v1177_v10 }
 0x787   :  { %v528_v17 = vor.u32 1.1754944e-38, %v527_v5  ;;  %vm526_vm1 = vcmp.eq.f32.partialorder %v525_v8, 8.507059e+37 }
 0x78b   :  { %v1257_v9 = vpop.eup %1256 }
 0x78c   :  { %v517_v11 = vmul.f32 %v1257_v9, %v514_v7  ;;  %v1259_v14 = vpop.eup %1258  ;;  %vm522_vm14 = vweird.f32 %v1257_v9 }
 0x78d   :  { %v515_v2 = vadd.f32 1.0, %v1259_v14  ;;  %vm523_vm0 = vmor %vm521_vm15, %vm522_vm14 }
 0x78e   :  { %v518_v12 = vsub.f32 1.0, %v517_v11 }
 0x78f   :  { %1260 = vrcp.f32 %v515_v2  ;;  %v542_v27 = vand.u32 2147483648, %v515_v2  ;;  %vm536_vm4 = vweird.f32 %v515_v2  ;;  %v540_v28 = vand.u32 2147483647, %v515_v2 }
 0x790   :  { %v519_v13 = vmul.f32 %v1257_v9, %v518_v12 }
 0x791   :  { %v543_v30 = vor.u32 1.1754944e-38, %v542_v27  ;;  %vm541_vm6 = vcmp.eq.f32.partialorder %v540_v28, 8.507059e+37 }
 0x792   :  { %v520_v4 = vadd.f32 %v1257_v9, %v519_v13 }
 0x794   :  { %v524_v15 = vsel %vm523_vm0, %v1257_v9, %v520_v4 }
 0x795   :  { %v529_v20 = vsel %vm526_vm1, %v528_v17, %v524_v15  ;;  %v1261_v22 = vpop.eup %1260 }
 0x796   :  { %v532_v23 = vmul.f32 %v1261_v22, %v515_v2  ;;  %vm537_vm3 = vweird.f32 %v1261_v22  ;;  %v554_v36 = vmul.f32 %v550_v34, %v529_v20 }
 0x797   :  { %vm538_vm5 = vmor %vm536_vm4, %vm537_vm3 }
 0x798   :  { %v533_v24 = vsub.f32 1.0, %v532_v23 }
 0x79a   :  { %v534_v25 = vmul.f32 %v1261_v22, %v533_v24 }
 0x79c   :  { %v535_v26 = vadd.f32 %v1261_v22, %v534_v25 }
 0x79e   :  { %v539_v29 = vsel %vm538_vm5, %v1261_v22, %v535_v26 }
 0x79f   :  { %v544_v32 = vsel %vm541_vm6, %v543_v30, %v539_v29 }
 0x7a0   :  { %v555_v37 = vmul.f32 %v551_v35, %v544_v32 }
 0x7db   :  { %v559_v19 = vpop.permute.xlu2 %558 }
 0x7dc   :  { %v564_v21 = vmul.f32 %v559_v19, %v529_v20 }
 0x7de   :  { %568 = vrot.lane.b32.xlu1 %v564_v21, %s1387_s15 }
 0x7f4   :  { %v561_v31 = vpop.permute.xlu0 %560 }
 0x7f5   :  { %v565_v33 = vmul.f32 %v561_v31, %v544_v32 }
 0x7f7   :  { %570 = vrot.lane.b32.xlu2 %v565_v33, %s1387_s15 }
 0x850   :  { %v569_v38 = vpop.permute.xlu1 %568 }
 0x851   :  { %v571_v39 = vpop.permute.xlu2 %570  ;;  %v1576_v41 = vadd.f32 %v569_v38, %v554_v36 }
 0x852   :  { %v1578_v42 = vadd.f32 %v571_v39, %v555_v37 }
 0x853   :  { %1262 = vtanh.f32 %v1576_v41  ;;  %v675_v33 = vrot.slane %v1576_v41, 7 }
 0x854   :  { %1264 = vtanh.f32 %v1578_v42  ;;  %v676_v38 = vrot.slane %v1578_v42, 7 }
 0x859   :  { %v1263_v43 = vpop.eup %1262 }
 0x85a   :  { %v1265_v44 = vpop.eup %1264  ;;  %580 = vrot.lane.b32.xlu0 %v1263_v43, %s1388_s17 }
 0x85b   :  { %582 = vrot.lane.b32.xlu1 %v1265_v44, %s1388_s17 }
 0x8cc   :  { %v581_v45 = vpop.permute.xlu0 %580 }
 0x8cd   :  { %v583_v40 = vpop.permute.xlu1 %582  ;;  %v1584_v47 = vmul.f32 %v581_v45, %v529_v20 }
 0x8ce   :  { %v1586_v48 = vmul.f32 %v583_v40, %v544_v32 }
 0x8cf   :  { %v599_v49 = vrot.slane %v1584_v47, 3 }
 0x8d0   :  { %v600_v52 = vrot.slane %v1586_v48, 2 }
 0x8d2   :  { %v601_v53 = vsel %vm227_vm11, %v600_v52, %v599_v49 }
 0x8d3   :  { %602 = vrot.lane.b32.xlu2 %v601_v53, %s1387_s15 }
 0x92d   :  { %v603_v46 = vpop.permute.xlu2 %602 }
 0x92e   :  { %1178 = vmatmul.msk.f32.vlgmr.msra.gmra.mxu2 %vm103_vm2, %v603_v46 }
 0x9b1   :  { %v623_v54 = vpop.f32.mrf.mxu2 }
 0x9b2   :  { %v627_v58 = vrot.slane %v623_v54, 4  ;;  %v628_v55 = vrot.slane %v623_v54, 5 }
 0x9b4   :  { %v631_v59 = vadd.f32 %v627_v58, %v1490_v18  ;;  %v632_v60 = vadd.f32 %v628_v55, %v1487_v16 }
 0x9b6   :  { %1266 = vtanh.f32 %v631_v59  ;;  %v1179_v0 = vmul.f32 -1.442695, %v631_v59  ;;  %v1180_v1 = vmul.f32 -1.442695, %v632_v60 }
 0x9b7   :  { %1268 = vtanh.f32 %v632_v60 }
 0x9b8   :  { %1270 = vpow2.f32 %v1179_v0 }
 0x9b9   :  { %1272 = vpow2.f32 %v1180_v1 }
 0x9bc   :  { %v1267_v61 = vpop.eup %1266 }
 0x9bd   :  { %v1269_v62 = vpop.eup %1268  ;;  %683 = vrot.lane.b32.xlu0 %v1267_v61, %s1388_s17 }
 0x9be   :  { %685 = vrot.lane.b32.xlu1 %v1269_v62, %s1388_s17  ;;  %v1271_v6 = vpop.eup %1270 }
 0x9bf   :  { %v1273_v7 = vpop.eup %1272  ;;  %v639_v9 = vadd.f32 1.0, %v1271_v6 }
 0x9c0   :  { %v640_v10 = vadd.f32 1.0, %v1273_v7 }
 0x9c1   :  { %1274 = vrcp.f32 %v639_v9  ;;  %v652_v19 = vand.u32 2147483648, %v639_v9  ;;  %vm646_vm9 = vweird.f32 %v639_v9  ;;  %v650_v21 = vand.u32 2147483647, %v639_v9 }
 0x9c2   :  { %1276 = vrcp.f32 %v640_v10  ;;  %v667_v20 = vand.u32 2147483648, %v640_v10  ;;  %vm661_vm10 = vweird.f32 %v640_v10  ;;  %v665_v22 = vand.u32 2147483647, %v640_v10 }
 0x9c3   :  { %v653_v25 = vor.u32 1.1754944e-38, %v652_v19  ;;  %vm651_vm14 = vcmp.eq.f32.partialorder %v650_v21, 8.507059e+37 }
 0x9c4   :  { %v668_v26 = vor.u32 1.1754944e-38, %v667_v20  ;;  %vm666_vm15 = vcmp.eq.f32.partialorder %v665_v22, 8.507059e+37 }
 0x9c7   :  { %v1275_v11 = vpop.eup %1274 }
 0x9c8   :  { %v1277_v12 = vpop.eup %1276  ;;  %v642_v13 = vmul.f32 %v1275_v11, %v639_v9  ;;  %vm647_vm7 = vweird.f32 %v1275_v11 }
 0x9c9   :  { %v657_v14 = vmul.f32 %v1277_v12, %v640_v10  ;;  %vm662_vm8 = vweird.f32 %v1277_v12  ;;  %vm648_vm12 = vmor %vm646_vm9, %vm647_vm7 }
 0x9ca   :  { %v643_v2 = vsub.f32 1.0, %v642_v13  ;;  %vm663_vm13 = vmor %vm661_vm10, %vm662_vm8 }
 0x9cb   :  { %v658_v4 = vsub.f32 1.0, %v657_v14 }
 0x9cc   :  { %v644_v5 = vmul.f32 %v1275_v11, %v643_v2 }
 0x9cd   :  { %v659_v8 = vmul.f32 %v1277_v12, %v658_v4 }
 0x9ce   :  { %v645_v15 = vadd.f32 %v1275_v11, %v644_v5 }
 0x9cf   :  { %v660_v17 = vadd.f32 %v1277_v12, %v659_v8 }
 0x9d0   :  { %v649_v23 = vsel %vm648_vm12, %v1275_v11, %v645_v15 }
 0x9d1   :  { %v664_v24 = vsel %vm663_vm13, %v1277_v12, %v660_v17  ;;  %v654_v28 = vsel %vm651_vm14, %v653_v25, %v649_v23 }
 0x9d2   :  { %v669_v30 = vsel %vm666_vm15, %v668_v26, %v664_v24  ;;  %v679_v34 = vmul.f32 %v675_v33, %v654_v28 }
 0x9d3   :  { %v680_v39 = vmul.f32 %v676_v38, %v669_v30 }
 0xa2f   :  { %v684_v27 = vpop.permute.xlu0 %683 }
 0xa30   :  { %v686_v29 = vpop.permute.xlu1 %685  ;;  %v689_v31 = vmul.f32 %v684_v27, %v654_v28 }
 0xa31   :  { %v690_v32 = vmul.f32 %v686_v29, %v669_v30 }
 0xa32   :  { %693 = vrot.lane.b32.xlu2 %v689_v31, %s1387_s15 }
 0xa33   :  { %695 = vrot.lane.b32.xlu0 %v690_v32, %s1387_s15 }
 0xa8c   :  { %v694_v35 = vpop.permute.xlu2 %693 }
 0xa8d   :  { %v1600_v36 = vadd.f32 %v694_v35, %v679_v34 }
 0xa8f   :  { %1278 = vtanh.f32 %v1600_v36 }
 0xa95   :  { %v1279_v37 = vpop.eup %1278 }
 0xa96   :  { %705 = vrot.lane.b32.xlu1 %v1279_v37, %s1388_s17 }
 0xaa5   :  { %v696_v43 = vpop.permute.xlu0 %695 }
 0xaa6   :  { %v1605_v44 = vadd.f32 %v696_v43, %v680_v39  ;;  %v800_v43 = vrot.slane %v1600_v36, 7 }
 0xaa8   :  { %1280 = vtanh.f32 %v1605_v44  ;;  %v801_v34 = vrot.slane %v1605_v44, 7 }
 0xaae   :  { %v1281_v45 = vpop.eup %1280 }
 0xaaf   :  { %707 = vrot.lane.b32.xlu2 %v1281_v45, %s1388_s17 }
 0xb08   :  { %v706_v41 = vpop.permute.xlu1 %705 }
 0xb09   :  { %v708_v40 = vpop.permute.xlu2 %707  ;;  %v1609_v49 = vmul.f32 %v706_v41, %v654_v28 }
 0xb0a   :  { %v1611_v52 = vmul.f32 %v708_v40, %v669_v30 }
 0xb0b   :  { %v724_v53 = vrot.slane %v1609_v49, 4 }
 0xb0c   :  { %v725_v46 = vrot.slane %v1611_v52, 3 }
 0xb0e   :  { %v726_v42 = vsel %vm227_vm11, %v725_v46, %v724_v53 }
 0xb0f   :  { %727 = vrot.lane.b32.xlu0 %v726_v42, %s1387_s15 }
 0xb81   :  { %v728_v54 = vpop.permute.xlu0 %727 }
 0xb82   :  { %1181 = vmatmul.msk.f32.vlgmr.msra.gmra.mxu3 %vm103_vm2, %v728_v54 }
 0xc05   :  { %v748_v58 = vpop.f32.mrf.mxu3 }
 0xc06   :  { %v752_v55 = vrot.slane %v748_v58, 3  ;;  %v753_v59 = vrot.slane %v748_v58, 4 }
 0xc08   :  { %v756_v60 = vadd.f32 %v752_v55, %v1490_v18  ;;  %v757_v61 = vadd.f32 %v753_v59, %v1487_v16 }
 0xc0a   :  { %1282 = vtanh.f32 %v756_v60  ;;  %v1183_v1 = vmul.f32 -1.442695, %v757_v61  ;;  %v1182_v10 = vmul.f32 -1.442695, %v756_v60 }
 0xc0b   :  { %1284 = vtanh.f32 %v757_v61 }
 0xc0c   :  { %1286 = vpow2.f32 %v1183_v1 }
 0xc10   :  { %v1283_v62 = vpop.eup %1282 }
 0xc11   :  { %v1285_v0 = vpop.eup %1284  ;;  %808 = vrot.lane.b32.xlu1 %v1283_v62, %s1388_s17 }
 0xc12   :  { %810 = vrot.lane.b32.xlu2 %v1285_v0, %s1388_s17  ;;  %v1287_v6 = vpop.eup %1286 }
 0xc13   :  { %v765_v7 = vadd.f32 1.0, %v1287_v6 }
 0xc15   :  { %1288 = vrcp.f32 %v765_v7  ;;  %v792_v5 = vand.u32 2147483648, %v765_v7  ;;  %vm786_vm1 = vweird.f32 %v765_v7  ;;  %v790_v8 = vand.u32 2147483647, %v765_v7 }
 0xc16   :  { %1290 = vpow2.f32 %v1182_v10 }
 0xc17   :  { %v793_v17 = vor.u32 1.1754944e-38, %v792_v5  ;;  %vm791_vm4 = vcmp.eq.f32.partialorder %v790_v8, 8.507059e+37 }
 0xc1b   :  { %v1289_v9 = vpop.eup %1288 }
 0xc1c   :  { %v782_v11 = vmul.f32 %v1289_v9, %v765_v7  ;;  %v1291_v13 = vpop.eup %1290  ;;  %vm787_vm0 = vweird.f32 %v1289_v9 }
 0xc1d   :  { %v764_v2 = vadd.f32 1.0, %v1291_v13  ;;  %vm788_vm3 = vmor %vm786_vm1, %vm787_vm0 }
 0xc1e   :  { %v783_v12 = vsub.f32 1.0, %v782_v11 }
 0xc1f   :  { %1292 = vrcp.f32 %v764_v2  ;;  %v777_v27 = vand.u32 2147483648, %v764_v2  ;;  %vm771_vm6 = vweird.f32 %v764_v2  ;;  %v775_v28 = vand.u32 2147483647, %v764_v2 }
 0xc20   :  { %v784_v14 = vmul.f32 %v1289_v9, %v783_v12 }
 0xc21   :  { %v778_v30 = vor.u32 1.1754944e-38, %v777_v27  ;;  %vm776_vm8 = vcmp.eq.f32.partialorder %v775_v28, 8.507059e+37 }
 0xc22   :  { %v785_v4 = vadd.f32 %v1289_v9, %v784_v14 }
 0xc24   :  { %v789_v15 = vsel %vm788_vm3, %v1289_v9, %v785_v4 }
 0xc25   :  { %v794_v20 = vsel %vm791_vm4, %v793_v17, %v789_v15  ;;  %v1293_v21 = vpop.eup %1292 }
 0xc26   :  { %v767_v23 = vmul.f32 %v1293_v21, %v764_v2  ;;  %vm772_vm5 = vweird.f32 %v1293_v21  ;;  %v805_v35 = vmul.f32 %v801_v34, %v794_v20 }
 0xc27   :  { %vm773_vm7 = vmor %vm771_vm6, %vm772_vm5 }
 0xc28   :  { %v768_v24 = vsub.f32 1.0, %v767_v23 }
 0xc2a   :  { %v769_v25 = vmul.f32 %v1293_v21, %v768_v24 }
 0xc2c   :  { %v770_v26 = vadd.f32 %v1293_v21, %v769_v25 }
 0xc2e   :  { %v774_v29 = vsel %vm773_vm7, %v1293_v21, %v770_v26 }
 0xc2f   :  { %v779_v32 = vsel %vm776_vm8, %v778_v30, %v774_v29 }
 0xc30   :  { %v804_v45 = vmul.f32 %v800_v43, %v779_v32 }
 0xc6c   :  { %v811_v19 = vpop.permute.xlu2 %810 }
 0xc6d   :  { %v815_v22 = vmul.f32 %v811_v19, %v794_v20 }
 0xc6f   :  { %820 = vrot.lane.b32.xlu1 %v815_v22, %s1387_s15 }
 0xc83   :  { %v809_v31 = vpop.permute.xlu1 %808 }
 0xc84   :  { %v814_v33 = vmul.f32 %v809_v31, %v779_v32 }
 0xc86   :  { %818 = vrot.lane.b32.xlu0 %v814_v33, %s1387_s15 }
 0xce1   :  { %v821_v37 = vpop.permute.xlu1 %820 }
 0xce2   :  { %v1625_v38 = vadd.f32 %v821_v37, %v805_v35 }
 0xce4   :  { %1294 = vtanh.f32 %v1625_v38  ;;  %v926_v43 = vrot.slane %v1625_v38, 7 }
 0xcea   :  { %v1295_v39 = vpop.eup %1294 }
 0xceb   :  { %832 = vrot.lane.b32.xlu0 %v1295_v39, %s1388_s17 }
 0xcf8   :  { %v819_v41 = vpop.permute.xlu0 %818 }
 0xcf9   :  { %v1630_v40 = vadd.f32 %v819_v41, %v804_v45 }
 0xcfb   :  { %1296 = vtanh.f32 %v1630_v40  ;;  %v925_v39 = vrot.slane %v1630_v40, 7 }
 0xd01   :  { %v1297_v53 = vpop.eup %1296 }
 0xd02   :  { %830 = vrot.lane.b32.xlu2 %v1297_v53, %s1388_s17 }
 0xd5c   :  { %v831_v44 = vpop.permute.xlu2 %830 }
 0xd5d   :  { %v833_v46 = vpop.permute.xlu0 %832  ;;  %v1634_v42 = vmul.f32 %v831_v44, %v779_v32 }
 0xd5e   :  { %v1636_v54 = vmul.f32 %v833_v46, %v794_v20 }
 0xd5f   :  { %v849_v58 = vrot.slane %v1634_v42, 5 }
 0xd60   :  { %v850_v55 = vrot.slane %v1636_v54, 4 }
 0xd62   :  { %v851_v36 = vsel %vm227_vm11, %v850_v55, %v849_v58 }
 0xd63   :  { %852 = vrot.lane.b32.xlu1 %v851_v36, %s1387_s15 }
 0xdd5   :  { %v853_v59 = vpop.permute.xlu1 %852 }
 0xdd6   :  { %1184 = vmatmul.msk.f32.vlgmr.msrb.gmra.mxu0 %vm103_vm2, %v853_v59 }
 0xe53   :  { %v873_v60 = vpop.f32.mrf.mxu0 }
 0xe54   :  { %v877_v61 = vrot.slane %v873_v60, 2  ;;  %v878_v62 = vrot.slane %v873_v60, 3 }
 0xe56   :  { %v881_v0 = vadd.f32 %v877_v61, %v1490_v18  ;;  %v882_v1 = vadd.f32 %v878_v62, %v1487_v16 }
 0xe58   :  { %1298 = vtanh.f32 %v881_v0  ;;  %v1185_v9 = vmul.f32 -1.442695, %v881_v0  ;;  %v1186_v13 = vmul.f32 -1.442695, %v882_v1 }
 0xe59   :  { %1300 = vtanh.f32 %v882_v1 }
 0xe5a   :  { %1302 = vpow2.f32 %v1185_v9 }
 0xe5e   :  { %v1299_v6 = vpop.eup %1298 }
 0xe5f   :  { %v1301_v7 = vpop.eup %1300  ;;  %933 = vrot.lane.b32.xlu2 %v1299_v6, %s1388_s17 }
 0xe60   :  { %935 = vrot.lane.b32.xlu0 %v1301_v7, %s1388_s17  ;;  %v1303_v10 = vpop.eup %1302 }
 0xe61   :  { %v889_v11 = vadd.f32 1.0, %v1303_v10 }
 0xe63   :  { %1304 = vrcp.f32 %v889_v11  ;;  %v902_v17 = vand.u32 2147483648, %v889_v11  ;;  %vm896_vm10 = vweird.f32 %v889_v11  ;;  %v900_v19 = vand.u32 2147483647, %v889_v11 }
 0xe64   :  { %1306 = vpow2.f32 %v1186_v13 }
 0xe65   :  { %v903_v21 = vor.u32 1.1754944e-38, %v902_v17  ;;  %vm901_vm13 = vcmp.eq.f32.partialorder %v900_v19, 8.507059e+37 }
 0xe69   :  { %v1305_v12 = vpop.eup %1304 }
 0xe6a   :  { %v892_v14 = vmul.f32 %v1305_v12, %v889_v11  ;;  %v1307_v5 = vpop.eup %1306  ;;  %vm897_vm9 = vweird.f32 %v1305_v12 }
 0xe6b   :  { %v890_v8 = vadd.f32 1.0, %v1307_v5  ;;  %vm898_vm12 = vmor %vm896_vm10, %vm897_vm9  ;;  %vm223_vm10 = vcmask 253952  }
 0xe6c   :  { %v893_v2 = vsub.f32 1.0, %v892_v14 }
 0xe6d   :  { %1308 = vrcp.f32 %v890_v8  ;;  %v917_v30 = vand.u32 2147483648, %v890_v8  ;;  %vm911_vm15 = vweird.f32 %v890_v8  ;;  %v915_v31 = vand.u32 2147483647, %v890_v8 }
 0xe6e   :  { %v894_v4 = vmul.f32 %v1305_v12, %v893_v2 }
 0xe6f   :  { %v918_v33 = vor.u32 1.1754944e-38, %v917_v30  ;;  %vm916_vm1 = vcmp.eq.f32.partialorder %v915_v31, 8.507059e+37 }
 0xe70   :  { %v895_v15 = vadd.f32 %v1305_v12, %v894_v4 }
 0xe72   :  { %v899_v20 = vsel %vm898_vm12, %v1305_v12, %v895_v15  ;;  %vm596_vm12 = vcmask 257027  }
 0xe73   :  { %v904_v23 = vsel %vm901_vm13, %v903_v21, %v899_v20  ;;  %v1309_v25 = vpop.eup %1308  ;;  %vm971_vm13 = vcmask 260102  }
 0xe74   :  { %v907_v26 = vmul.f32 %v1309_v25, %v890_v8  ;;  %vm912_vm14 = vweird.f32 %v1309_v25  ;;  %v929_v45 = vmul.f32 %v925_v39, %v904_v23 }
 0xe75   :  { %vm913_vm0 = vmor %vm911_vm15, %vm912_vm14  ;;  %vm347_vm14 = vcmask 254977   ;;  %vm721_vm15 = vcmask 258052  }
 0xe76   :  { %v908_v27 = vsub.f32 1.0, %v907_v26 }
 0xe78   :  { %v909_v28 = vmul.f32 %v1309_v25, %v908_v27 }
 0xe7a   :  { %v910_v29 = vadd.f32 %v1309_v25, %v909_v28 }
 0xe7c   :  { %v914_v32 = vsel %vm913_vm0, %v1309_v25, %v910_v29  ;;  %vm471_vm0 = vcmask 256002  }
 0xe7d   :  { %v919_v35 = vsel %vm916_vm1, %v918_v33, %v914_v32  ;;  %vm846_vm1 = vcmask 259077  }
 0xe7e   :  { %v930_v41 = vmul.f32 %v926_v43, %v919_v35 }
 0xeb9   :  { %v934_v22 = vpop.permute.xlu2 %933 }
 0xeba   :  { %v939_v24 = vmul.f32 %v934_v22, %v904_v23 }
 0xebc   :  { %943 = vrot.lane.b32.xlu1 %v939_v24, %s1387_s15 }
 0xed2   :  { %v936_v34 = vpop.permute.xlu0 %935 }
 0xed3   :  { %v940_v37 = vmul.f32 %v936_v34, %v919_v35 }
 0xed5   :  { %945 = vrot.lane.b32.xlu2 %v940_v37, %s1387_s15 }
 0xf2e   :  { %v944_v53 = vpop.permute.xlu1 %943 }
 0xf2f   :  { %v946_v44 = vpop.permute.xlu2 %945  ;;  %v1651_v46 = vadd.f32 %v944_v53, %v929_v45 }
 0xf30   :  { %v1653_v58 = vadd.f32 %v946_v44, %v930_v41 }
 0xf31   :  { %1310 = vtanh.f32 %v1651_v46  ;;  %v1050_v41 = vrot.slane %v1651_v46, 7 }
 0xf32   :  { %1312 = vtanh.f32 %v1653_v58 }
 0xf37   :  { %v1311_v55 = vpop.eup %1310 }
 0xf38   :  { %v1313_v36 = vpop.eup %1312  ;;  %955 = vrot.lane.b32.xlu0 %v1311_v55, %s1388_s17 }
 0xf39   :  { %957 = vrot.lane.b32.xlu1 %v1313_v36, %s1388_s17 }
 0xfaa   :  { %v956_v40 = vpop.permute.xlu0 %955 }
 0xfab   :  { %v958_v38 = vpop.permute.xlu1 %957  ;;  %v1659_v59 = vmul.f32 %v956_v40, %v904_v23 }
 0xfac   :  { %v1661_v60 = vmul.f32 %v958_v38, %v919_v35 }
 0xfad   :  { %v974_v61 = vrot.slane %v1659_v59, 6 }
 0xfae   :  { %v975_v62 = vrot.slane %v1661_v60, 5 }
 0xfb0   :  { %v976_v0 = vsel %vm227_vm11, %v975_v62, %v974_v61 }
 0xfb1   :  { %977 = vrot.lane.b32.xlu2 %v976_v0, %s1387_s15 }
0x100b   :  { %v978_v1 = vpop.permute.xlu2 %977 }
0x100c   :  { %1187 = vmatmul.msk.f32.vlgmr.msra.gmra.mxu1 %vm103_vm2, %v978_v1 }
0x1089   :  { %v998_v6 = vpop.f32.mrf.mxu1 }
0x108a   :  { %v1002_v7 = vrot.slane %v998_v6, 1  ;;  %v1003_v9 = vrot.slane %v998_v6, 2 }
0x108c   :  { %v1006_v10 = vadd.f32 %v1002_v7, %v1490_v18  ;;  %v1007_v11 = vadd.f32 %v1003_v9, %v1487_v16 }
0x108e   :  { %1314 = vtanh.f32 %v1006_v10  ;;  %v1188_v14 = vmul.f32 -1.442695, %v1006_v10  ;;  %v1189_v2 = vmul.f32 -1.442695, %v1007_v11  ;;  %v1121_v10 = vld [vmem:[%s1752_s4 + $0x18] sm:$0xff] }
0x108f   :  { %1316 = vtanh.f32 %v1007_v11  ;;  %v1120_v11 = vld [vmem:[%s1752_s4 + $0x10] sm:$0xff]  ;;  %1144 = vmatpush.msrb.mxu2 %v1121_v10 }
0x1090   :  { %1318 = vpow2.f32 %v1188_v14 }
0x1091   :  { %1320 = vpow2.f32 %v1189_v2  ;;  %1145 = vmatpush.msrb.mxu2 %v1120_v11 }
0x1094   :  { %v1315_v12 = vpop.eup %1314 }
0x1095   :  { %v1317_v13 = vpop.eup %1316  ;;  %1058 = vrot.lane.b32.xlu0 %v1315_v12, %s1388_s17  ;;  %v1119_v12 = vld [vmem:[%s1752_s4 + $0x8] sm:$0xff] }
0x1096   :  { %1060 = vrot.lane.b32.xlu1 %v1317_v13, %s1388_s17  ;;  %v1319_v4 = vpop.eup %1318  ;;  %v1118_v13 = vld [vmem:[%s1752_s4] sm:$0xff]  ;;  %1146 = vmatpush.msrb.mxu2 %v1119_v12 }
0x1097   :  { %v1321_v5 = vpop.eup %1320  ;;  %v1014_v8 = vadd.f32 1.0, %v1319_v4 }
0x1098   :  { %v1015_v15 = vadd.f32 1.0, %v1321_v5  ;;  %1147 = vmatpush.msrb.mxu2 %v1118_v13 }
0x1099   :  { %1322 = vrcp.f32 %v1014_v8  ;;  %v1027_v26 = vand.u32 2147483648, %v1014_v8  ;;  %vm1021_vm4 = vweird.f32 %v1014_v8  ;;  %v1025_v28 = vand.u32 2147483647, %v1014_v8 }
0x109a   :  { %1324 = vrcp.f32 %v1015_v15  ;;  %v1042_v27 = vand.u32 2147483648, %v1015_v15  ;;  %vm1036_vm5 = vweird.f32 %v1015_v15  ;;  %v1040_v29 = vand.u32 2147483647, %v1015_v15 }
0x109b   :  { %v1028_v32 = vor.u32 1.1754944e-38, %v1027_v26  ;;  %vm1026_vm8 = vcmp.eq.f32.partialorder %v1025_v28, 8.507059e+37 }
0x109c   :  { %v1043_v33 = vor.u32 1.1754944e-38, %v1042_v27  ;;  %vm1041_vm9 = vcmp.eq.f32.partialorder %v1040_v29, 8.507059e+37 }
0x109f   :  { %v1323_v18 = vpop.eup %1322 }
0x10a0   :  { %v1325_v16 = vpop.eup %1324  ;;  %v1017_v17 = vmul.f32 %v1323_v18, %v1014_v8  ;;  %vm1022_vm11 = vweird.f32 %v1323_v18 }
0x10a1   :  { %v1032_v19 = vmul.f32 %v1325_v16, %v1015_v15  ;;  %vm1037_vm3 = vweird.f32 %v1325_v16  ;;  %vm1023_vm6 = vmor %vm1021_vm4, %vm1022_vm11  ;;  %vm1096_vm11 = vcmask 261127  }
0x10a2   :  { %v1018_v20 = vsub.f32 1.0, %v1017_v17  ;;  %vm1038_vm7 = vmor %vm1036_vm5, %vm1037_vm3  ;;  %vm1155_vm3 = vcmask 31744  }
0x10a3   :  { %v1033_v21 = vsub.f32 1.0, %v1032_v19 }
0x10a4   :  { %v1019_v22 = vmul.f32 %v1323_v18, %v1018_v20 }
0x10a5   :  { %v1034_v23 = vmul.f32 %v1325_v16, %v1033_v21 }
0x10a6   :  { %v1020_v24 = vadd.f32 %v1323_v18, %v1019_v22 }
0x10a7   :  { %v1035_v25 = vadd.f32 %v1325_v16, %v1034_v23 }
0x10a8   :  { %v1024_v30 = vsel %vm1023_vm6, %v1323_v18, %v1020_v24 }
0x10a9   :  { %v1039_v31 = vsel %vm1038_vm7, %v1325_v16, %v1035_v25  ;;  %v1029_v35 = vsel %vm1026_vm8, %v1028_v32, %v1024_v30  ;;  %v1201_v16 = vld [vmem:[%s1753_s5] ss:$0 sm:$0xff] }
0x10aa   :  { %v1044_v39 = vsel %vm1041_vm9, %v1043_v33, %v1039_v31  ;;  %v1054_v53 = vmul.f32 %v1050_v41, %v1029_v35 }
0x1107   :  { %v1059_v34 = vpop.permute.xlu0 %1058 }
0x1108   :  { %v1061_v37 = vpop.permute.xlu1 %1060  ;;  %v1064_v43 = vmul.f32 %v1059_v34, %v1029_v35 }
0x1109   :  { %v1065_v45 = vmul.f32 %v1061_v37, %v1044_v39 }
0x110a   :  { %1068 = vrot.lane.b32.xlu2 %v1064_v43, %s1387_s15 }
0x110b   :  { %1070 = vrot.lane.b32.xlu0 %v1065_v45, %s1387_s15 }
0x1113   :  { %217 = vrot.lane.b32.xlu0 %v1508_v3, %s1387_s15  ;;  %v1051_v3 = vrot.slane %v1653_v58, 7 }
0x111b   :  { %590 = vrot.lane.b32.xlu0 %v1584_v47, %s1387_s15  ;;  %v1055_v47 = vmul.f32 %v1051_v3, %v1044_v39 }
0x1123   :  { %965 = vrot.lane.b32.xlu0 %v1659_v59, %s1387_s15 }
0x112b   :  { %343 = vrot.lane.b32.xlu0 %v1536_v57, %s1387_s15 }
0x1133   :  { %717 = vrot.lane.b32.xlu0 %v1611_v52, %s1387_s15 }
0x1164   :  { %v1069_v44 = vpop.permute.xlu2 %1068 }
0x1165   :  { %v1074_v55 = vadd.f32 %v1069_v44, %v1054_v53 }
0x1167   :  { %1326 = vtanh.f32 %v1074_v55 }
0x116d   :  { %v1327_v36 = vpop.eup %1326 }
0x116e   :  { %1080 = vrot.lane.b32.xlu1 %v1327_v36, %s1388_s17 }
0x1176   :  { %341 = vrot.lane.b32.xlu1 %v1534_v56, %s1387_s15 }
0x117d   :  { %v1071_v40 = vpop.permute.xlu0 %1070 }
0x117e   :  { %v1075_v57 = vadd.f32 %v1071_v40, %v1055_v47  ;;  %715 = vrot.lane.b32.xlu1 %v1609_v49, %s1387_s15 }
0x1180   :  { %1328 = vtanh.f32 %v1075_v57  ;;  %v1107_v62 = vrot.slane %v1075_v57, 7 }
0x1185   :  { %v218_v52 = vpop.permute.xlu0 %217 }
0x1186   :  { %v1329_v46 = vpop.eup %1328  ;;  %224 = vst.msk [vmem:[#allocation4] sm:$0x1] %vm223_vm10, %v218_v52  ;;  %467 = vrot.lane.b32.xlu1 %v1561_v51, %s1387_s15 }
0x1187   :  { %1082 = vrot.lane.b32.xlu2 %v1329_v46, %s1388_s17 }
0x118d   :  { %v591_v56 = vpop.permute.xlu0 %590 }
0x118e   :  { %597 = vst.msk [vmem:[#allocation4] sm:$0x8] %vm596_vm12, %v591_v56 }
0x118f   :  { %465 = vrot.lane.b32.xlu2 %v1559_v50, %s1387_s15 }
0x1195   :  { %v966_v49 = vpop.permute.xlu0 %965 }
0x1196   :  { %972 = vst.msk [vmem:[#allocation4] sm:$0x40] %vm971_vm13, %v966_v49 }
0x1197   :  { %840 = vrot.lane.b32.xlu2 %v1634_v42, %s1387_s15 }
0x119d   :  { %v344_v58 = vpop.permute.xlu0 %343 }
0x119e   :  { %349 = vst.msk [vmem:[#allocation4 + $0x8] sm:$0x2] %vm347_vm14, %v344_v58 }
0x119f   :  { %219 = vrot.lane.b32.xlu2 %v1505_v63, %s1387_s15 }
0x11a5   :  { %v718_v51 = vpop.permute.xlu0 %717 }
0x11a6   :  { %723 = vst.msk [vmem:[#allocation4 + $0x8] sm:$0x10] %vm721_vm15, %v718_v51 }
0x11a7   :  { %592 = vrot.lane.b32.xlu2 %v1586_v48, %s1387_s15 }
0x11af   :  { %967 = vrot.lane.b32.xlu2 %v1661_v60, %s1387_s15 }
0x11b7   :  { %1108 = vrot.lane.b32.xlu2 %v1074_v55, %s1389_s3 }
0x11e0   :  { %v1081_v50 = vpop.permute.xlu1 %1080 }
0x11e1   :  { %v1083_v42 = vpop.permute.xlu2 %1082  ;;  %v1086_v38 = vmul.f32 %v1081_v50, %v1029_v35 }
0x11e2   :  { %v1087_v59 = vmul.f32 %v1083_v42, %v1044_v39 }
0x11e3   :  { %1090 = vrot.lane.b32.xlu1 %v1086_v38, %s1387_s15 }
0x11e4   :  { %1092 = vrot.lane.b32.xlu0 %v1087_v59, %s1387_s15  ;;  %v1099_v60 = vrot.slane %v1087_v59, 7 }
0x11e8   :  { %v342_v63 = vpop.permute.xlu1 %341 }
0x11e9   :  { %v466_v61 = vpop.permute.xlu2 %465  ;;  %348 = vst.msk [vmem:[#allocation4] sm:$0x2] %vm347_vm14, %v342_v63 }
0x11ea   :  { %472 = vst.msk [vmem:[#allocation4] sm:$0x4] %vm471_vm0, %v466_v61 }
0x11eb   :  { %842 = vrot.lane.b32.xlu1 %v1636_v54, %s1387_s15 }
0x11ec   :  { %1110 = vrot.lane.b32.xlu0 %v1107_v62, %s1389_s3 }
0x11f0   :  { %v716_v48 = vpop.permute.xlu1 %715 }
0x11f1   :  { %v841_v0 = vpop.permute.xlu2 %840  ;;  %722 = vst.msk [vmem:[#allocation4] sm:$0x10] %vm721_vm15, %v716_v48 }
0x11f2   :  { %847 = vst.msk [vmem:[#allocation4] sm:$0x20] %vm846_vm1, %v841_v0 }
0x11f3   :  { %1100 = vrot.lane.b32.xlu1 %v1099_v60, %s1387_s15 }
0x11f8   :  { %v468_v1 = vpop.permute.xlu1 %467 }
0x11f9   :  { %v220_v6 = vpop.permute.xlu2 %219  ;;  %473 = vst.msk [vmem:[#allocation4 + $0x8] sm:$0x4] %vm471_vm0, %v468_v1 }
0x11fa   :  { %225 = vst.msk [vmem:[#allocation4 + $0x8] sm:$0x1] %vm223_vm10, %v220_v6 }
0x1201   :  { %v593_v7 = vpop.permute.xlu2 %592 }
0x1202   :  { %598 = vst.msk [vmem:[#allocation4 + $0x8] sm:$0x8] %vm596_vm12, %v593_v7 }
0x1209   :  { %v968_v54 = vpop.permute.xlu2 %967 }
0x120a   :  { %973 = vst.msk [vmem:[#allocation4 + $0x8] sm:$0x40] %vm971_vm13, %v968_v54 }
0x1211   :  { %v1109_v9 = vpop.permute.xlu2 %1108 }
0x1212   :  { %1114 = vst.msk [vmem:[#allocation3 - $0x7] sm:$0x80] %vm1096_vm11, %v1109_v9 }
0x1255   :  { %v1091_v14 = vpop.permute.xlu1 %1090 }
0x1256   :  { %v1093_v2 = vpop.permute.xlu0 %1092  ;;  %1097 = vst.msk [vmem:[#allocation4] sm:$0x80] %vm1096_vm11, %v1091_v14 }
0x1257   :  { %1098 = vst.msk [vmem:[#allocation4 + $0x8] sm:$0x80] %vm1096_vm11, %v1093_v2 }
0x1258   :  { %1103 = vst.msk [vmem:[#allocation2 - $0x7] sm:$0x80] %vm1096_vm11, %v1091_v14 }
0x125d   :  { %v843_v4 = vpop.permute.xlu1 %842  ;;  %v1116_v5 = vld [vmem:[#allocation4] sm:$0xff] }
0x125e   :  { %v1111_v8 = vpop.permute.xlu0 %1110  ;;  %848 = vst.msk [vmem:[#allocation4 + $0x8] sm:$0x20] %vm846_vm1, %v843_v4  ;;  %1190 = vmatmul.msk.f32.vlgmr.msrb.gmra.mxu2 %vm103_vm2, %v1116_v5 }
0x125f   :  { %1115 = vst.msk [vmem:[#allocation3 + $0x1] sm:$0x1] %vm223_vm10, %v1111_v8 }
0x1265   :  { %v1101_v15 = vpop.permute.xlu1 %1100  ;;  %v1117_v18 = vld [vmem:[#allocation4 + $0x8] sm:$0xff] }
0x1266   :  { %1104 = vst.msk [vmem:[#allocation2 + $0x1] sm:$0x1] %vm223_vm10, %v1101_v15  ;;  %1191 = vmatmul.msk.f32.gmra.mxu2 %vm103_vm2, %v1117_v18 }
0x12e1   :  { %v1149_v17 = vpop.f32.mrf.mxu2 }
0x12e2   :  { %v1150_v19 = vadd.f32 %v1201_v16, %v1149_v17 }
0x12e4   :  { %1156 = vst.msk [vmem:[%s1754_s6] sm:$0xff] %vm1155_vm3, %v1150_v19 }
0x12e9   :  { %v1152_v20 = vpop.f32.mrf.mxu2 }
0x12ea   :  { %v1153_v21 = vadd.f32 %v1201_v16, %v1152_v20 }
0x12ec   :  { %1157 = vst.msk [vmem:[%s1754_s6 + $0x8] sm:$0xff] %vm1155_vm3, %v1153_v21 }
0x12ed   :  { %1162 = vsyncpa [#allocation6], 1 }
0x12ee   :  { %1163 = vsyncpa [#allocation8], 1 }

</bundles_post_ra>
